<compile_context>
chip_gen: v6e
topology: v6e:2x2x1
jax: 0.10.0
libtpu: 0.0.40
codegen_flags: <defaults>
</compile_context>

<pallas_src>
import functools

import jax
import jax.numpy as jnp
from jax import lax
from jax.experimental import pallas as pl
from jax.experimental.pallas import tpu as pltpu


def flowhead_kernel(x_ref, mask_ref, w1_ref, b1_ref, w2p_ref, b2_ref, out_ref,
                    hpad_ref, *, H, Wp, C_hid, C_out, lane_block, chid_block):
    # x_ref   : (1, C_in, (H+3)*Wp) bf16  padded input, spatial flattened
    # mask_ref: (1, H*Wp)           bf16  1.0 on real columns (w < W), else 0.0
    # w1_ref  : (9, C_hid, C_in)    bf16  tap-major (t = dy*3 + dx)
    # b1_ref  : (C_hid, 1)          f32
    # w2p_ref : (m_pad, C_hid)      bf16  9 conv2 taps packed (row = t*C_out+c)
    # b2_ref  : (C_out, 1)          f32
    # out_ref : (1, C_out, H*Wp)    f32   NCHW with padded width (cropped later)
    # hpad_ref: (C_hid, (H+3)*Wp)   bf16  scratch: zero-padded ReLU(conv1)
    La_full = H * Wp
    Shid = hpad_ref.shape[1]
    HALO = 2 * Wp + 2            # extra lanes of hidden slab a conv2 tile needs

    # Zero only the border strips of the hidden scratch; the interior is fully
    # rewritten below (wrap/pad columns masked to zero).  Safe with a
    # "parallel" batch axis: no cross-step scratch-state assumptions.
    hpad_ref[:, pl.ds(0, Wp + 1)] = jnp.zeros((C_hid, Wp + 1), jnp.bfloat16)
    tail = Shid - (Wp + 1 + La_full)
    hpad_ref[:, pl.ds(Wp + 1 + La_full, tail)] = jnp.zeros((C_hid, tail),
                                                           jnp.bfloat16)

    n_full = La_full // lane_block
    rem = La_full - n_full * lane_block

    # ---- conv1 (3x3, pad=1) + ReLU : vreg-sized accumulators, taps innermost ----
    def conv1_tile(base, tl):
        m = mask_ref[:, pl.ds(base, tl)]                       # (1, tl) bf16
        for cb0 in range(0, C_hid, chid_block):                # few static iters
            cb = min(chid_block, C_hid - cb0)
            # Seed the accumulator with the broadcast bias (saves a +b pass).
            acc = jnp.broadcast_to(b1_ref[pl.ds(cb0, cb), :], (cb, tl))
            for t in range(9):                                 # unrolled taps
                off = (t // 3) * Wp + (t % 3)                  # dy*Wp + dx
                xs = x_ref[0, :, pl.ds(base + off, tl)]        # (C_in, tl) bf16
                acc = acc + jnp.dot(w1_ref[t, pl.ds(cb0, cb), :], xs,
                                    preferred_element_type=jnp.float32)
            h = jnp.maximum(acc, 0.0).astype(jnp.bfloat16) * m  # zero pad cols
            hpad_ref[pl.ds(cb0, cb), pl.ds(Wp + 1 + base, tl)] = h

    def conv1_body(i, carry):
        conv1_tile(i * lane_block, lane_block)
        return carry

    if n_full > 0:
        lax.fori_loop(0, n_full, conv1_body, 0)
    if rem > 0:
        conv1_tile(n_full * lane_block, rem)

    # ---- conv2 (3x3, pad=1): one packed matmul per tile + 9 tiny shift-adds ----
    def conv2_tile(base, tl):
        slab = hpad_ref[:, pl.ds(base, tl + HALO)]             # (C_hid, tl+HALO)
        y = jnp.dot(w2p_ref[...], slab,
                    preferred_element_type=jnp.float32)        # (m_pad, tl+HALO)
        acc = y[0:C_out, 0:tl] + b2_ref[...]                   # tap t=0 (+bias)
        for t in range(1, 9):
            off = (t // 3) * Wp + (t % 3)
            acc = acc + y[t * C_out:(t + 1) * C_out, off:off + tl]
        out_ref[0, :, pl.ds(base, tl)] = acc.astype(out_ref.dtype)

    def conv2_body(i, carry):
        conv2_tile(i * lane_block, lane_block)
        return carry

    if n_full > 0:
        lax.fori_loop(0, n_full, conv2_body, 0)
    if rem > 0:
        conv2_tile(n_full * lane_block, rem)


def flow_head(x_nchw, w1, b1, w2, b2, *, lane_block=256, chid_block=128):
    """Pallas FlowHead forward.

    x_nchw: (N, C_in, H, W) f32; w1: (C_hid, C_in, 3, 3); b1: (C_hid,)
    w2: (C_out, C_hid, 3, 3); b2: (C_out,).  Returns (N, C_out, H, W) f32.
    """
    N, C_in, H, W = x_nchw.shape
    C_hid = w1.shape[0]
    C_out = w2.shape[0]
    Wp = W + 2                    # padded width (stride between spatial rows)
    Sin = (H + 3) * Wp            # pad (1 top, 2 bottom, 1 left, 1 right), flat
    La_full = H * Wp

    # Input prep: pad + flatten + cast bf16 (one fused elementwise XLA pass).
    xp = jnp.pad(x_nchw, ((0, 0), (0, 0), (1, 2), (1, 1)))
    x_flat = xp.reshape(N, C_in, Sin).astype(jnp.bfloat16)

    # bf16 mask: 1.0 on real output columns, 0.0 on the 2 pad columns per row.
    mask = ((jnp.arange(La_full) % Wp) < W).astype(jnp.bfloat16)
    mask = mask.reshape(1, La_full)

    # conv1 weights tap-major; (C_out, C_in) orientation feeds the
    # channels-first matmuls.
    w1_k = jnp.transpose(w1, (2, 3, 0, 1)).reshape(9, C_hid, C_in)
    w1_k = w1_k.astype(jnp.bfloat16)
    # conv2: all 9 taps packed into one LHS so the hidden slab is streamed
    # through the MXU once per tile; pad rows up to a sublane multiple of 8.
    w2_k = jnp.transpose(w2, (2, 3, 0, 1)).reshape(9 * C_out, C_hid)
    m_pack = 9 * C_out
    m_pad = ((m_pack + 7) // 8) * 8
    if m_pad != m_pack:
        w2_k = jnp.pad(w2_k, ((0, m_pad - m_pack), (0, 0)))
    w2_k = w2_k.astype(jnp.bfloat16)
    b1_k = b1.reshape(C_hid, 1).astype(jnp.float32)
    b2_k = b2.reshape(C_out, 1).astype(jnp.float32)

    # VMEM budget: double-buffered blocks + full-image hidden scratch.
    vmem_need = (
        2 * (C_in * Sin * 2)                     # x block
        + 2 * (C_out * La_full * 4)              # out block
        + 2 * (La_full * 2)                      # mask
        + 2 * ((9 * C_hid * C_in + m_pad * C_hid) * 2 + (C_hid + C_out) * 4)
        + C_hid * Sin * 2                        # hpad scratch
    )
    vmem_limit = int(min(max(int(1.4 * vmem_need) + (8 << 20), 32 << 20),
                         96 << 20))

    kernel = functools.partial(
        flowhead_kernel, H=H, Wp=Wp, C_hid=C_hid, C_out=C_out,
        lane_block=lane_block, chid_block=chid_block)

    out_flat = pl.pallas_call(
        kernel,
        out_shape=jax.ShapeDtypeStruct((N, C_out, La_full), jnp.float32),
        grid_spec=pltpu.PrefetchScalarGridSpec(
            num_scalar_prefetch=0,
            grid=(N,),
            in_specs=[
                pl.BlockSpec((1, C_in, Sin), lambda n: (n, 0, 0)),
                pl.BlockSpec((1, La_full), lambda n: (0, 0)),
                pl.BlockSpec((9, C_hid, C_in), lambda n: (0, 0, 0)),
                pl.BlockSpec((C_hid, 1), lambda n: (0, 0)),
                pl.BlockSpec((m_pad, C_hid), lambda n: (0, 0)),
                pl.BlockSpec((C_out, 1), lambda n: (0, 0)),
            ],
            out_specs=pl.BlockSpec((1, C_out, La_full), lambda n: (n, 0, 0)),
            scratch_shapes=[pltpu.VMEM((C_hid, Sin), jnp.bfloat16)],
        ),
        compiler_params=pltpu.CompilerParams(
            dimension_semantics=("parallel",),
            vmem_limit_bytes=vmem_limit),
    )(x_flat, mask, w1_k, b1_k, w2_k, b2_k)

    # Crop the 2 pad columns per row (tiny: only C_out channels) -> NCHW.
    return out_flat.reshape(N, C_out, H, Wp)[:, :, :, :W]


def flow_head_ref(x, w1, b1, w2, b2):
    """Pure-JAX reference matching the PyTorch module semantics (NCHW)."""
    h = jax.lax.conv_general_dilated(
        x, w1, window_strides=(1, 1), padding=((1, 1), (1, 1)),
        dimension_numbers=("NCHW", "OIHW", "NCHW"),
        precision=jax.lax.Precision.HIGHEST)
    h = jnp.maximum(h + b1[None, :, None, None], 0.0)
    o = jax.lax.conv_general_dilated(
        h, w2, window_strides=(1, 1), padding=((1, 1), (1, 1)),
        dimension_numbers=("NCHW", "OIHW", "NCHW"),
        precision=jax.lax.Precision.HIGHEST)
    return o + b2[None, :, None, None]


if __name__ == "__main__":
    # Small, deterministic setup (module defaults are 128/256/2; use small dims).
    N, C_in, C_hid, C_out, H, W = 2, 32, 64, 2, 16, 16

    key = jax.random.PRNGKey(0)
    k1, k2, k3, k4, k5 = jax.random.split(key, 5)
    x = jax.random.normal(k1, (N, C_in, H, W), jnp.float32)
    w1 = jax.random.normal(k2, (C_hid, C_in, 3, 3), jnp.float32) * 0.05
    b1 = jax.random.normal(k3, (C_hid,), jnp.float32) * 0.05
    w2 = jax.random.normal(k4, (C_out, C_hid, 3, 3), jnp.float32) * 0.05
    b2 = jax.random.normal(k5, (C_out,), jnp.float32) * 0.05

    out = jax.block_until_ready(flow_head(x, w1, b1, w2, b2))
    ref = jax.block_until_ready(flow_head_ref(x, w1, b1, w2, b2))

    assert out.shape == (N, C_out, H, W), out.shape
    max_err = float(jnp.max(jnp.abs(out - ref)))
    assert jnp.allclose(out, ref, atol=2e-2, rtol=2e-2), max_err

    print("KERNEL_OK")
</pallas_src>

<mosaic_0001>
module attributes {stable_mosaic.version = 11 : i64} {
  func.func @flowhead_kernel(%arg0: i32, %arg1: memref<1x32x342xbf16, #tpu.memory_space<vmem>>, %arg2: memref<1x288xbf16, #tpu.memory_space<vmem>>, %arg3: memref<9x64x32xbf16, #tpu.memory_space<vmem>>, %arg4: memref<64x1xf32, #tpu.memory_space<vmem>>, %arg5: memref<24x64xbf16, #tpu.memory_space<vmem>>, %arg6: memref<2x1xf32, #tpu.memory_space<vmem>>, %arg7: memref<1x2x288xf32, #tpu.memory_space<vmem>>, %arg8: memref<64x342xbf16, #tpu.memory_space<vmem>>) attributes {dimension_semantics = [#tpu.dimension_semantics<parallel>], iteration_bounds = array<i64: 2>, scalar_prefetch = 0 : i64, scratch_operands = 1 : i64, tpu.core_type = #tpu.core_type<tc>, window_params = [{transform_indices = @transform_0, window_bounds = array<i64: 1, 32, 342>}, {pipeline_mode = #tpu.pipeline_mode<synchronous>, transform_indices = @transform_1, window_bounds = array<i64: 1, 288>}, {pipeline_mode = #tpu.pipeline_mode<synchronous>, transform_indices = @transform_2, window_bounds = array<i64: 9, 64, 32>}, {pipeline_mode = #tpu.pipeline_mode<synchronous>, transform_indices = @transform_3, window_bounds = array<i64: 64, 1>}, {pipeline_mode = #tpu.pipeline_mode<synchronous>, transform_indices = @transform_4, window_bounds = array<i64: 24, 64>}, {pipeline_mode = #tpu.pipeline_mode<synchronous>, transform_indices = @transform_5, window_bounds = array<i64: 2, 1>}, {transform_indices = @transform_6, window_bounds = array<i64: 1, 2, 288>}]} {
    %cst = arith.constant 0.000000e+00 : bf16
    %0 = vector.broadcast %cst : bf16 to vector<64x19xbf16>
    %c0 = arith.constant 0 : index
    %c0_0 = arith.constant 0 : index
    %1 = vector.load %arg8[%c0, %c0_0] : memref<64x342xbf16, #tpu.memory_space<vmem>>, vector<64x19xbf16>
    tpu.vector_store %arg8[%c0, %c0_0], %0 {strides = array<i32>} : memref<64x342xbf16, #tpu.memory_space<vmem>>, vector<64x19xbf16>,
    %cst_1 = arith.constant 0.000000e+00 : bf16
    %2 = vector.broadcast %cst_1 : bf16 to vector<64x35xbf16>
    %c0_2 = arith.constant 0 : index
    %c307 = arith.constant 307 : index
    %3 = vector.load %arg8[%c0_2, %c307] : memref<64x342xbf16, #tpu.memory_space<vmem>>, vector<64x35xbf16>
    tpu.vector_store %arg8[%c0_2, %c307], %2 {strides = array<i32>} : memref<64x342xbf16, #tpu.memory_space<vmem>>, vector<64x35xbf16>,
    %c0_i32 = arith.constant 0 : i32
    %c256_i32 = arith.constant 256 : i32
    %4 = arith.muli %c0_i32, %c256_i32 : i32
    %c0_3 = arith.constant 0 : index
    %5 = arith.index_cast %4 : i32 to index
    %6 = vector.load %arg2[%c0_3, %5] : memref<1x288xbf16, #tpu.memory_space<vmem>>, vector<1x256xbf16>
    %c0_4 = arith.constant 0 : index
    %c0_5 = arith.constant 0 : index
    %7 = vector.load %arg4[%c0_4, %c0_5] : memref<64x1xf32, #tpu.memory_space<vmem>>, vector<64x1xf32>
    %8 = vector.shape_cast %7 : vector<64x1xf32> to vector<64x1xf32>
    %9 = vector.broadcast %8 : vector<64x1xf32> to vector<64x256xf32>
    %c0_i32_6 = arith.constant 0 : i32
    %10 = arith.addi %4, %c0_i32_6 : i32
    %c0_7 = arith.constant 0 : index
    %c0_8 = arith.constant 0 : index
    %11 = arith.index_cast %10 : i32 to index
    %12 = vector.load %arg1[%c0_7, %c0_8, %11] : memref<1x32x342xbf16, #tpu.memory_space<vmem>>, vector<1x32x256xbf16>
    %13 = vector.shape_cast %12 : vector<1x32x256xbf16> to vector<32x256xbf16>
    %c0_9 = arith.constant 0 : index
    %c0_10 = arith.constant 0 : index
    %c0_11 = arith.constant 0 : index
    %14 = vector.load %arg3[%c0_9, %c0_10, %c0_11] : memref<9x64x32xbf16, #tpu.memory_space<vmem>>, vector<1x64x32xbf16>
    %15 = vector.shape_cast %14 : vector<1x64x32xbf16> to vector<64x32xbf16>
    %cst_12 = arith.constant dense<0.000000e+00> : vector<64x256xf32>
    %16 = tpu.matmul %15, %13, %cst_12 {dimension_numbers = #tpu.dot_dimension_numbers<[1], [0], [0], [1], [0, 0, 1, 1], [], []>} : vector<64x32xbf16>, vector<32x256xbf16>, vector<64x256xf32> -> vector<64x256xf32>
    %17 = arith.addf %9, %16 : vector<64x256xf32>
    %c1_i32 = arith.constant 1 : i32
    %18 = arith.addi %4, %c1_i32 : i32
    %c0_13 = arith.constant 0 : index
    %c0_14 = arith.constant 0 : index
    %19 = arith.index_cast %18 : i32 to index
    %20 = vector.load %arg1[%c0_13, %c0_14, %19] : memref<1x32x342xbf16, #tpu.memory_space<vmem>>, vector<1x32x256xbf16>
    %21 = vector.shape_cast %20 : vector<1x32x256xbf16> to vector<32x256xbf16>
    %c1 = arith.constant 1 : index
    %c0_15 = arith.constant 0 : index
    %c0_16 = arith.constant 0 : index
    %22 = vector.load %arg3[%c1, %c0_15, %c0_16] : memref<9x64x32xbf16, #tpu.memory_space<vmem>>, vector<1x64x32xbf16>
    %23 = vector.shape_cast %22 : vector<1x64x32xbf16> to vector<64x32xbf16>
    %cst_17 = arith.constant dense<0.000000e+00> : vector<64x256xf32>
    %24 = tpu.matmul %23, %21, %cst_17 {dimension_numbers = #tpu.dot_dimension_numbers<[1], [0], [0], [1], [0, 0, 1, 1], [], []>} : vector<64x32xbf16>, vector<32x256xbf16>, vector<64x256xf32> -> vector<64x256xf32>
    %25 = arith.addf %17, %24 : vector<64x256xf32>
    %c2_i32 = arith.constant 2 : i32
    %26 = arith.addi %4, %c2_i32 : i32
    %c0_18 = arith.constant 0 : index
    %c0_19 = arith.constant 0 : index
    %27 = arith.index_cast %26 : i32 to index
    %28 = vector.load %arg1[%c0_18, %c0_19, %27] : memref<1x32x342xbf16, #tpu.memory_space<vmem>>, vector<1x32x256xbf16>
    %29 = vector.shape_cast %28 : vector<1x32x256xbf16> to vector<32x256xbf16>
    %c2 = arith.constant 2 : index
    %c0_20 = arith.constant 0 : index
    %c0_21 = arith.constant 0 : index
    %30 = vector.load %arg3[%c2, %c0_20, %c0_21] : memref<9x64x32xbf16, #tpu.memory_space<vmem>>, vector<1x64x32xbf16>
    %31 = vector.shape_cast %30 : vector<1x64x32xbf16> to vector<64x32xbf16>
    %cst_22 = arith.constant dense<0.000000e+00> : vector<64x256xf32>
    %32 = tpu.matmul %31, %29, %cst_22 {dimension_numbers = #tpu.dot_dimension_numbers<[1], [0], [0], [1], [0, 0, 1, 1], [], []>} : vector<64x32xbf16>, vector<32x256xbf16>, vector<64x256xf32> -> vector<64x256xf32>
    %33 = arith.addf %25, %32 : vector<64x256xf32>
    %c18_i32 = arith.constant 18 : i32
    %34 = arith.addi %4, %c18_i32 : i32
    %c0_23 = arith.constant 0 : index
    %c0_24 = arith.constant 0 : index
    %35 = arith.index_cast %34 : i32 to index
    %36 = vector.load %arg1[%c0_23, %c0_24, %35] : memref<1x32x342xbf16, #tpu.memory_space<vmem>>, vector<1x32x256xbf16>
    %37 = vector.shape_cast %36 : vector<1x32x256xbf16> to vector<32x256xbf16>
    %c3 = arith.constant 3 : index
    %c0_25 = arith.constant 0 : index
    %c0_26 = arith.constant 0 : index
    %38 = vector.load %arg3[%c3, %c0_25, %c0_26] : memref<9x64x32xbf16, #tpu.memory_space<vmem>>, vector<1x64x32xbf16>
    %39 = vector.shape_cast %38 : vector<1x64x32xbf16> to vector<64x32xbf16>
    %cst_27 = arith.constant dense<0.000000e+00> : vector<64x256xf32>
    %40 = tpu.matmul %39, %37, %cst_27 {dimension_numbers = #tpu.dot_dimension_numbers<[1], [0], [0], [1], [0, 0, 1, 1], [], []>} : vector<64x32xbf16>, vector<32x256xbf16>, vector<64x256xf32> -> vector<64x256xf32>
    %41 = arith.addf %33, %40 : vector<64x256xf32>
    %c19_i32 = arith.constant 19 : i32
    %42 = arith.addi %4, %c19_i32 : i32
    %c0_28 = arith.constant 0 : index
    %c0_29 = arith.constant 0 : index
    %43 = arith.index_cast %42 : i32 to index
    %44 = vector.load %arg1[%c0_28, %c0_29, %43] : memref<1x32x342xbf16, #tpu.memory_space<vmem>>, vector<1x32x256xbf16>
    %45 = vector.shape_cast %44 : vector<1x32x256xbf16> to vector<32x256xbf16>
    %c4 = arith.constant 4 : index
    %c0_30 = arith.constant 0 : index
    %c0_31 = arith.constant 0 : index
    %46 = vector.load %arg3[%c4, %c0_30, %c0_31] : memref<9x64x32xbf16, #tpu.memory_space<vmem>>, vector<1x64x32xbf16>
    %47 = vector.shape_cast %46 : vector<1x64x32xbf16> to vector<64x32xbf16>
    %cst_32 = arith.constant dense<0.000000e+00> : vector<64x256xf32>
    %48 = tpu.matmul %47, %45, %cst_32 {dimension_numbers = #tpu.dot_dimension_numbers<[1], [0], [0], [1], [0, 0, 1, 1], [], []>} : vector<64x32xbf16>, vector<32x256xbf16>, vector<64x256xf32> -> vector<64x256xf32>
    %49 = arith.addf %41, %48 : vector<64x256xf32>
    %c20_i32 = arith.constant 20 : i32
    %50 = arith.addi %4, %c20_i32 : i32
    %c0_33 = arith.constant 0 : index
    %c0_34 = arith.constant 0 : index
    %51 = arith.index_cast %50 : i32 to index
    %52 = vector.load %arg1[%c0_33, %c0_34, %51] : memref<1x32x342xbf16, #tpu.memory_space<vmem>>, vector<1x32x256xbf16>
    %53 = vector.shape_cast %52 : vector<1x32x256xbf16> to vector<32x256xbf16>
    %c5 = arith.constant 5 : index
    %c0_35 = arith.constant 0 : index
    %c0_36 = arith.constant 0 : index
    %54 = vector.load %arg3[%c5, %c0_35, %c0_36] : memref<9x64x32xbf16, #tpu.memory_space<vmem>>, vector<1x64x32xbf16>
    %55 = vector.shape_cast %54 : vector<1x64x32xbf16> to vector<64x32xbf16>
    %cst_37 = arith.constant dense<0.000000e+00> : vector<64x256xf32>
    %56 = tpu.matmul %55, %53, %cst_37 {dimension_numbers = #tpu.dot_dimension_numbers<[1], [0], [0], [1], [0, 0, 1, 1], [], []>} : vector<64x32xbf16>, vector<32x256xbf16>, vector<64x256xf32> -> vector<64x256xf32>
    %57 = arith.addf %49, %56 : vector<64x256xf32>
    %c36_i32 = arith.constant 36 : i32
    %58 = arith.addi %4, %c36_i32 : i32
    %c0_38 = arith.constant 0 : index
    %c0_39 = arith.constant 0 : index
    %59 = arith.index_cast %58 : i32 to index
    %60 = vector.load %arg1[%c0_38, %c0_39, %59] : memref<1x32x342xbf16, #tpu.memory_space<vmem>>, vector<1x32x256xbf16>
    %61 = vector.shape_cast %60 : vector<1x32x256xbf16> to vector<32x256xbf16>
    %c6 = arith.constant 6 : index
    %c0_40 = arith.constant 0 : index
    %c0_41 = arith.constant 0 : index
    %62 = vector.load %arg3[%c6, %c0_40, %c0_41] : memref<9x64x32xbf16, #tpu.memory_space<vmem>>, vector<1x64x32xbf16>
    %63 = vector.shape_cast %62 : vector<1x64x32xbf16> to vector<64x32xbf16>
    %cst_42 = arith.constant dense<0.000000e+00> : vector<64x256xf32>
    %64 = tpu.matmul %63, %61, %cst_42 {dimension_numbers = #tpu.dot_dimension_numbers<[1], [0], [0], [1], [0, 0, 1, 1], [], []>} : vector<64x32xbf16>, vector<32x256xbf16>, vector<64x256xf32> -> vector<64x256xf32>
    %65 = arith.addf %57, %64 : vector<64x256xf32>
    %c37_i32 = arith.constant 37 : i32
    %66 = arith.addi %4, %c37_i32 : i32
    %c0_43 = arith.constant 0 : index
    %c0_44 = arith.constant 0 : index
    %67 = arith.index_cast %66 : i32 to index
    %68 = vector.load %arg1[%c0_43, %c0_44, %67] : memref<1x32x342xbf16, #tpu.memory_space<vmem>>, vector<1x32x256xbf16>
    %69 = vector.shape_cast %68 : vector<1x32x256xbf16> to vector<32x256xbf16>
    %c7 = arith.constant 7 : index
    %c0_45 = arith.constant 0 : index
    %c0_46 = arith.constant 0 : index
    %70 = vector.load %arg3[%c7, %c0_45, %c0_46] : memref<9x64x32xbf16, #tpu.memory_space<vmem>>, vector<1x64x32xbf16>
    %71 = vector.shape_cast %70 : vector<1x64x32xbf16> to vector<64x32xbf16>
    %cst_47 = arith.constant dense<0.000000e+00> : vector<64x256xf32>
    %72 = tpu.matmul %71, %69, %cst_47 {dimension_numbers = #tpu.dot_dimension_numbers<[1], [0], [0], [1], [0, 0, 1, 1], [], []>} : vector<64x32xbf16>, vector<32x256xbf16>, vector<64x256xf32> -> vector<64x256xf32>
    %73 = arith.addf %65, %72 : vector<64x256xf32>
    %c38_i32 = arith.constant 38 : i32
    %74 = arith.addi %4, %c38_i32 : i32
    %c0_48 = arith.constant 0 : index
    %c0_49 = arith.constant 0 : index
    %75 = arith.index_cast %74 : i32 to index
    %76 = vector.load %arg1[%c0_48, %c0_49, %75] : memref<1x32x342xbf16, #tpu.memory_space<vmem>>, vector<1x32x256xbf16>
    %77 = vector.shape_cast %76 : vector<1x32x256xbf16> to vector<32x256xbf16>
    %c8 = arith.constant 8 : index
    %c0_50 = arith.constant 0 : index
    %c0_51 = arith.constant 0 : index
    %78 = vector.load %arg3[%c8, %c0_50, %c0_51] : memref<9x64x32xbf16, #tpu.memory_space<vmem>>, vector<1x64x32xbf16>
    %79 = vector.shape_cast %78 : vector<1x64x32xbf16> to vector<64x32xbf16>
    %cst_52 = arith.constant dense<0.000000e+00> : vector<64x256xf32>
    %80 = tpu.matmul %79, %77, %cst_52 {dimension_numbers = #tpu.dot_dimension_numbers<[1], [0], [0], [1], [0, 0, 1, 1], [], []>} : vector<64x32xbf16>, vector<32x256xbf16>, vector<64x256xf32> -> vector<64x256xf32>
    %81 = arith.addf %73, %80 : vector<64x256xf32>
    %cst_53 = arith.constant 0.000000e+00 : f32
    %82 = vector.broadcast %cst_53 : f32 to vector<64x256xf32>
    %83 = arith.maximumf %81, %82 : vector<64x256xf32>
    %84 = arith.truncf %83 : vector<64x256xf32> to vector<64x256xbf16>
    %85 = vector.broadcast %6 : vector<1x256xbf16> to vector<64x256xbf16>
    %86 = arith.mulf %84, %85 : vector<64x256xbf16>
    %c19_i32_54 = arith.constant 19 : i32
    %87 = arith.addi %c19_i32_54, %4 : i32
    %c0_55 = arith.constant 0 : index
    %88 = arith.index_cast %87 : i32 to index
    %89 = vector.load %arg8[%c0_55, %88] : memref<64x342xbf16, #tpu.memory_space<vmem>>, vector<64x256xbf16>
    tpu.vector_store %arg8[%c0_55, %88], %86 {strides = array<i32>} : memref<64x342xbf16, #tpu.memory_space<vmem>>, vector<64x256xbf16>,
    %c1_i32_56 = arith.constant 1 : i32
    %c0_57 = arith.constant 0 : index
    %c256 = arith.constant 256 : index
    %90 = vector.load %arg2[%c0_57, %c256] : memref<1x288xbf16, #tpu.memory_space<vmem>>, vector<1x32xbf16>
    %c0_58 = arith.constant 0 : index
    %c0_59 = arith.constant 0 : index
    %91 = vector.load %arg4[%c0_58, %c0_59] : memref<64x1xf32, #tpu.memory_space<vmem>>, vector<64x1xf32>
    %92 = vector.shape_cast %91 : vector<64x1xf32> to vector<64x1xf32>
    %93 = vector.broadcast %92 : vector<64x1xf32> to vector<64x32xf32>
    %c0_60 = arith.constant 0 : index
    %c0_61 = arith.constant 0 : index
    %c256_62 = arith.constant 256 : index
    %94 = vector.load %arg1[%c0_60, %c0_61, %c256_62] : memref<1x32x342xbf16, #tpu.memory_space<vmem>>, vector<1x32x32xbf16>
    %95 = vector.shape_cast %94 : vector<1x32x32xbf16> to vector<32x32xbf16>
    %c0_63 = arith.constant 0 : index
    %c0_64 = arith.constant 0 : index
    %c0_65 = arith.constant 0 : index
    %96 = vector.load %arg3[%c0_63, %c0_64, %c0_65] : memref<9x64x32xbf16, #tpu.memory_space<vmem>>, vector<1x64x32xbf16>
    %97 = vector.shape_cast %96 : vector<1x64x32xbf16> to vector<64x32xbf16>
    %cst_66 = arith.constant dense<0.000000e+00> : vector<64x32xf32>
    %98 = tpu.matmul %97, %95, %cst_66 {dimension_numbers = #tpu.dot_dimension_numbers<[1], [0], [0], [1], [0, 0, 1, 1], [], []>} : vector<64x32xbf16>, vector<32x32xbf16>, vector<64x32xf32> -> vector<64x32xf32>
    %99 = arith.addf %93, %98 : vector<64x32xf32>
    %c0_67 = arith.constant 0 : index
    %c0_68 = arith.constant 0 : index
    %c257 = arith.constant 257 : index
    %100 = vector.load %arg1[%c0_67, %c0_68, %c257] : memref<1x32x342xbf16, #tpu.memory_space<vmem>>, vector<1x32x32xbf16>
    %101 = vector.shape_cast %100 : vector<1x32x32xbf16> to vector<32x32xbf16>
    %c1_69 = arith.constant 1 : index
    %c0_70 = arith.constant 0 : index
    %c0_71 = arith.constant 0 : index
    %102 = vector.load %arg3[%c1_69, %c0_70, %c0_71] : memref<9x64x32xbf16, #tpu.memory_space<vmem>>, vector<1x64x32xbf16>
    %103 = vector.shape_cast %102 : vector<1x64x32xbf16> to vector<64x32xbf16>
    %cst_72 = arith.constant dense<0.000000e+00> : vector<64x32xf32>
    %104 = tpu.matmul %103, %101, %cst_72 {dimension_numbers = #tpu.dot_dimension_numbers<[1], [0], [0], [1], [0, 0, 1, 1], [], []>} : vector<64x32xbf16>, vector<32x32xbf16>, vector<64x32xf32> -> vector<64x32xf32>
    %105 = arith.addf %99, %104 : vector<64x32xf32>
    %c0_73 = arith.constant 0 : index
    %c0_74 = arith.constant 0 : index
    %c258 = arith.constant 258 : index
    %106 = vector.load %arg1[%c0_73, %c0_74, %c258] : memref<1x32x342xbf16, #tpu.memory_space<vmem>>, vector<1x32x32xbf16>
    %107 = vector.shape_cast %106 : vector<1x32x32xbf16> to vector<32x32xbf16>
    %c2_75 = arith.constant 2 : index
    %c0_76 = arith.constant 0 : index
    %c0_77 = arith.constant 0 : index
    %108 = vector.load %arg3[%c2_75, %c0_76, %c0_77] : memref<9x64x32xbf16, #tpu.memory_space<vmem>>, vector<1x64x32xbf16>
    %109 = vector.shape_cast %108 : vector<1x64x32xbf16> to vector<64x32xbf16>
    %cst_78 = arith.constant dense<0.000000e+00> : vector<64x32xf32>
    %110 = tpu.matmul %109, %107, %cst_78 {dimension_numbers = #tpu.dot_dimension_numbers<[1], [0], [0], [1], [0, 0, 1, 1], [], []>} : vector<64x32xbf16>, vector<32x32xbf16>, vector<64x32xf32> -> vector<64x32xf32>
    %111 = arith.addf %105, %110 : vector<64x32xf32>
    %c0_79 = arith.constant 0 : index
    %c0_80 = arith.constant 0 : index
    %c274 = arith.constant 274 : index
    %112 = vector.load %arg1[%c0_79, %c0_80, %c274] : memref<1x32x342xbf16, #tpu.memory_space<vmem>>, vector<1x32x32xbf16>
    %113 = vector.shape_cast %112 : vector<1x32x32xbf16> to vector<32x32xbf16>
    %c3_81 = arith.constant 3 : index
    %c0_82 = arith.constant 0 : index
    %c0_83 = arith.constant 0 : index
    %114 = vector.load %arg3[%c3_81, %c0_82, %c0_83] : memref<9x64x32xbf16, #tpu.memory_space<vmem>>, vector<1x64x32xbf16>
    %115 = vector.shape_cast %114 : vector<1x64x32xbf16> to vector<64x32xbf16>
    %cst_84 = arith.constant dense<0.000000e+00> : vector<64x32xf32>
    %116 = tpu.matmul %115, %113, %cst_84 {dimension_numbers = #tpu.dot_dimension_numbers<[1], [0], [0], [1], [0, 0, 1, 1], [], []>} : vector<64x32xbf16>, vector<32x32xbf16>, vector<64x32xf32> -> vector<64x32xf32>
    %117 = arith.addf %111, %116 : vector<64x32xf32>
    %c0_85 = arith.constant 0 : index
    %c0_86 = arith.constant 0 : index
    %c275 = arith.constant 275 : index
    %118 = vector.load %arg1[%c0_85, %c0_86, %c275] : memref<1x32x342xbf16, #tpu.memory_space<vmem>>, vector<1x32x32xbf16>
    %119 = vector.shape_cast %118 : vector<1x32x32xbf16> to vector<32x32xbf16>
    %c4_87 = arith.constant 4 : index
    %c0_88 = arith.constant 0 : index
    %c0_89 = arith.constant 0 : index
    %120 = vector.load %arg3[%c4_87, %c0_88, %c0_89] : memref<9x64x32xbf16, #tpu.memory_space<vmem>>, vector<1x64x32xbf16>
    %121 = vector.shape_cast %120 : vector<1x64x32xbf16> to vector<64x32xbf16>
    %cst_90 = arith.constant dense<0.000000e+00> : vector<64x32xf32>
    %122 = tpu.matmul %121, %119, %cst_90 {dimension_numbers = #tpu.dot_dimension_numbers<[1], [0], [0], [1], [0, 0, 1, 1], [], []>} : vector<64x32xbf16>, vector<32x32xbf16>, vector<64x32xf32> -> vector<64x32xf32>
    %123 = arith.addf %117, %122 : vector<64x32xf32>
    %c0_91 = arith.constant 0 : index
    %c0_92 = arith.constant 0 : index
    %c276 = arith.constant 276 : index
    %124 = vector.load %arg1[%c0_91, %c0_92, %c276] : memref<1x32x342xbf16, #tpu.memory_space<vmem>>, vector<1x32x32xbf16>
    %125 = vector.shape_cast %124 : vector<1x32x32xbf16> to vector<32x32xbf16>
    %c5_93 = arith.constant 5 : index
    %c0_94 = arith.constant 0 : index
    %c0_95 = arith.constant 0 : index
    %126 = vector.load %arg3[%c5_93, %c0_94, %c0_95] : memref<9x64x32xbf16, #tpu.memory_space<vmem>>, vector<1x64x32xbf16>
    %127 = vector.shape_cast %126 : vector<1x64x32xbf16> to vector<64x32xbf16>
    %cst_96 = arith.constant dense<0.000000e+00> : vector<64x32xf32>
    %128 = tpu.matmul %127, %125, %cst_96 {dimension_numbers = #tpu.dot_dimension_numbers<[1], [0], [0], [1], [0, 0, 1, 1], [], []>} : vector<64x32xbf16>, vector<32x32xbf16>, vector<64x32xf32> -> vector<64x32xf32>
    %129 = arith.addf %123, %128 : vector<64x32xf32>
    %c0_97 = arith.constant 0 : index
    %c0_98 = arith.constant 0 : index
    %c292 = arith.constant 292 : index
    %130 = vector.load %arg1[%c0_97, %c0_98, %c292] : memref<1x32x342xbf16, #tpu.memory_space<vmem>>, vector<1x32x32xbf16>
    %131 = vector.shape_cast %130 : vector<1x32x32xbf16> to vector<32x32xbf16>
    %c6_99 = arith.constant 6 : index
    %c0_100 = arith.constant 0 : index
    %c0_101 = arith.constant 0 : index
    %132 = vector.load %arg3[%c6_99, %c0_100, %c0_101] : memref<9x64x32xbf16, #tpu.memory_space<vmem>>, vector<1x64x32xbf16>
    %133 = vector.shape_cast %132 : vector<1x64x32xbf16> to vector<64x32xbf16>
    %cst_102 = arith.constant dense<0.000000e+00> : vector<64x32xf32>
    %134 = tpu.matmul %133, %131, %cst_102 {dimension_numbers = #tpu.dot_dimension_numbers<[1], [0], [0], [1], [0, 0, 1, 1], [], []>} : vector<64x32xbf16>, vector<32x32xbf16>, vector<64x32xf32> -> vector<64x32xf32>
    %135 = arith.addf %129, %134 : vector<64x32xf32>
    %c0_103 = arith.constant 0 : index
    %c0_104 = arith.constant 0 : index
    %c293 = arith.constant 293 : index
    %136 = vector.load %arg1[%c0_103, %c0_104, %c293] : memref<1x32x342xbf16, #tpu.memory_space<vmem>>, vector<1x32x32xbf16>
    %137 = vector.shape_cast %136 : vector<1x32x32xbf16> to vector<32x32xbf16>
    %c7_105 = arith.constant 7 : index
    %c0_106 = arith.constant 0 : index
    %c0_107 = arith.constant 0 : index
    %138 = vector.load %arg3[%c7_105, %c0_106, %c0_107] : memref<9x64x32xbf16, #tpu.memory_space<vmem>>, vector<1x64x32xbf16>
    %139 = vector.shape_cast %138 : vector<1x64x32xbf16> to vector<64x32xbf16>
    %cst_108 = arith.constant dense<0.000000e+00> : vector<64x32xf32>
    %140 = tpu.matmul %139, %137, %cst_108 {dimension_numbers = #tpu.dot_dimension_numbers<[1], [0], [0], [1], [0, 0, 1, 1], [], []>} : vector<64x32xbf16>, vector<32x32xbf16>, vector<64x32xf32> -> vector<64x32xf32>
    %141 = arith.addf %135, %140 : vector<64x32xf32>
    %c0_109 = arith.constant 0 : index
    %c0_110 = arith.constant 0 : index
    %c294 = arith.constant 294 : index
    %142 = vector.load %arg1[%c0_109, %c0_110, %c294] : memref<1x32x342xbf16, #tpu.memory_space<vmem>>, vector<1x32x32xbf16>
    %143 = vector.shape_cast %142 : vector<1x32x32xbf16> to vector<32x32xbf16>
    %c8_111 = arith.constant 8 : index
    %c0_112 = arith.constant 0 : index
    %c0_113 = arith.constant 0 : index
    %144 = vector.load %arg3[%c8_111, %c0_112, %c0_113] : memref<9x64x32xbf16, #tpu.memory_space<vmem>>, vector<1x64x32xbf16>
    %145 = vector.shape_cast %144 : vector<1x64x32xbf16> to vector<64x32xbf16>
    %cst_114 = arith.constant dense<0.000000e+00> : vector<64x32xf32>
    %146 = tpu.matmul %145, %143, %cst_114 {dimension_numbers = #tpu.dot_dimension_numbers<[1], [0], [0], [1], [0, 0, 1, 1], [], []>} : vector<64x32xbf16>, vector<32x32xbf16>, vector<64x32xf32> -> vector<64x32xf32>
    %147 = arith.addf %141, %146 : vector<64x32xf32>
    %cst_115 = arith.constant 0.000000e+00 : f32
    %148 = vector.broadcast %cst_115 : f32 to vector<64x32xf32>
    %149 = arith.maximumf %147, %148 : vector<64x32xf32>
    %150 = arith.truncf %149 : vector<64x32xf32> to vector<64x32xbf16>
    %151 = vector.broadcast %90 : vector<1x32xbf16> to vector<64x32xbf16>
    %152 = arith.mulf %150, %151 : vector<64x32xbf16>
    %c0_116 = arith.constant 0 : index
    %c275_117 = arith.constant 275 : index
    %153 = vector.load %arg8[%c0_116, %c275_117] : memref<64x342xbf16, #tpu.memory_space<vmem>>, vector<64x32xbf16>
    tpu.vector_store %arg8[%c0_116, %c275_117], %152 {strides = array<i32>} : memref<64x342xbf16, #tpu.memory_space<vmem>>, vector<64x32xbf16>,
    %c0_i32_118 = arith.constant 0 : i32
    %c256_i32_119 = arith.constant 256 : i32
    %154 = arith.muli %c0_i32_118, %c256_i32_119 : i32
    %c0_120 = arith.constant 0 : index
    %155 = arith.index_cast %154 : i32 to index
    %156 = vector.load %arg8[%c0_120, %155] : memref<64x342xbf16, #tpu.memory_space<vmem>>, vector<64x294xbf16>
    %c0_121 = arith.constant 0 : index
    %c0_122 = arith.constant 0 : index
    %157 = vector.load %arg5[%c0_121, %c0_122] : memref<24x64xbf16, #tpu.memory_space<vmem>>, vector<24x64xbf16>
    %cst_123 = arith.constant dense<0.000000e+00> : vector<24x294xf32>
    %158 = tpu.matmul %157, %156, %cst_123 {dimension_numbers = #tpu.dot_dimension_numbers<[1], [0], [0], [1], [0, 0, 1, 1], [], []>} : vector<24x64xbf16>, vector<64x294xbf16>, vector<24x294xf32> -> vector<24x294xf32>
    %159 = vector.extract_strided_slice %158 {offsets = [0, 0], sizes = [2, 256], strides = [1, 1]} : vector<24x294xf32> to vector<2x256xf32>
    %c0_124 = arith.constant 0 : index
    %c0_125 = arith.constant 0 : index
    %160 = vector.load %arg6[%c0_124, %c0_125] : memref<2x1xf32, #tpu.memory_space<vmem>>, vector<2x1xf32>
    %161 = vector.broadcast %160 : vector<2x1xf32> to vector<2x256xf32>
    %162 = arith.addf %159, %161 : vector<2x256xf32>
    %163 = vector.extract_strided_slice %158 {offsets = [2, 1], sizes = [2, 256], strides = [1, 1]} : vector<24x294xf32> to vector<2x256xf32>
    %164 = arith.addf %162, %163 : vector<2x256xf32>
    %165 = vector.extract_strided_slice %158 {offsets = [4, 2], sizes = [2, 256], strides = [1, 1]} : vector<24x294xf32> to vector<2x256xf32>
    %166 = arith.addf %164, %165 : vector<2x256xf32>
    %167 = vector.extract_strided_slice %158 {offsets = [6, 18], sizes = [2, 256], strides = [1, 1]} : vector<24x294xf32> to vector<2x256xf32>
    %168 = arith.addf %166, %167 : vector<2x256xf32>
    %169 = vector.extract_strided_slice %158 {offsets = [8, 19], sizes = [2, 256], strides = [1, 1]} : vector<24x294xf32> to vector<2x256xf32>
    %170 = arith.addf %168, %169 : vector<2x256xf32>
    %171 = vector.extract_strided_slice %158 {offsets = [10, 20], sizes = [2, 256], strides = [1, 1]} : vector<24x294xf32> to vector<2x256xf32>
    %172 = arith.addf %170, %171 : vector<2x256xf32>
    %173 = vector.extract_strided_slice %158 {offsets = [12, 36], sizes = [2, 256], strides = [1, 1]} : vector<24x294xf32> to vector<2x256xf32>
    %174 = arith.addf %172, %173 : vector<2x256xf32>
    %175 = vector.extract_strided_slice %158 {offsets = [14, 37], sizes = [2, 256], strides = [1, 1]} : vector<24x294xf32> to vector<2x256xf32>
    %176 = arith.addf %174, %175 : vector<2x256xf32>
    %177 = vector.extract_strided_slice %158 {offsets = [16, 38], sizes = [2, 256], strides = [1, 1]} : vector<24x294xf32> to vector<2x256xf32>
    %178 = arith.addf %176, %177 : vector<2x256xf32>
    %c0_126 = arith.constant 0 : index
    %c0_127 = arith.constant 0 : index
    %179 = arith.index_cast %154 : i32 to index
    %180 = vector.load %arg7[%c0_126, %c0_127, %179] : memref<1x2x288xf32, #tpu.memory_space<vmem>>, vector<1x2x256xf32>
    %181 = vector.shape_cast %180 : vector<1x2x256xf32> to vector<2x256xf32>
    %182 = vector.shape_cast %178 : vector<2x256xf32> to vector<1x2x256xf32>
    tpu.vector_store %arg7[%c0_126, %c0_127, %179], %182 {strides = array<i32>} : memref<1x2x288xf32, #tpu.memory_space<vmem>>, vector<1x2x256xf32>,
    %c1_i32_128 = arith.constant 1 : i32
    %c0_129 = arith.constant 0 : index
    %c256_130 = arith.constant 256 : index
    %183 = vector.load %arg8[%c0_129, %c256_130] : memref<64x342xbf16, #tpu.memory_space<vmem>>, vector<64x70xbf16>
    %c0_131 = arith.constant 0 : index
    %c0_132 = arith.constant 0 : index
    %184 = vector.load %arg5[%c0_131, %c0_132] : memref<24x64xbf16, #tpu.memory_space<vmem>>, vector<24x64xbf16>
    %cst_133 = arith.constant dense<0.000000e+00> : vector<24x70xf32>
    %185 = tpu.matmul %184, %183, %cst_133 {dimension_numbers = #tpu.dot_dimension_numbers<[1], [0], [0], [1], [0, 0, 1, 1], [], []>} : vector<24x64xbf16>, vector<64x70xbf16>, vector<24x70xf32> -> vector<24x70xf32>
    %186 = vector.extract_strided_slice %185 {offsets = [0, 0], sizes = [2, 32], strides = [1, 1]} : vector<24x70xf32> to vector<2x32xf32>
    %c0_134 = arith.constant 0 : index
    %c0_135 = arith.constant 0 : index
    %187 = vector.load %arg6[%c0_134, %c0_135] : memref<2x1xf32, #tpu.memory_space<vmem>>, vector<2x1xf32>
    %188 = vector.broadcast %187 : vector<2x1xf32> to vector<2x32xf32>
    %189 = arith.addf %186, %188 : vector<2x32xf32>
    %190 = vector.extract_strided_slice %185 {offsets = [2, 1], sizes = [2, 32], strides = [1, 1]} : vector<24x70xf32> to vector<2x32xf32>
    %191 = arith.addf %189, %190 : vector<2x32xf32>
    %192 = vector.extract_strided_slice %185 {offsets = [4, 2], sizes = [2, 32], strides = [1, 1]} : vector<24x70xf32> to vector<2x32xf32>
    %193 = arith.addf %191, %192 : vector<2x32xf32>
    %194 = vector.extract_strided_slice %185 {offsets = [6, 18], sizes = [2, 32], strides = [1, 1]} : vector<24x70xf32> to vector<2x32xf32>
    %195 = arith.addf %193, %194 : vector<2x32xf32>
    %196 = vector.extract_strided_slice %185 {offsets = [8, 19], sizes = [2, 32], strides = [1, 1]} : vector<24x70xf32> to vector<2x32xf32>
    %197 = arith.addf %195, %196 : vector<2x32xf32>
    %198 = vector.extract_strided_slice %185 {offsets = [10, 20], sizes = [2, 32], strides = [1, 1]} : vector<24x70xf32> to vector<2x32xf32>
    %199 = arith.addf %197, %198 : vector<2x32xf32>
    %200 = vector.extract_strided_slice %185 {offsets = [12, 36], sizes = [2, 32], strides = [1, 1]} : vector<24x70xf32> to vector<2x32xf32>
    %201 = arith.addf %199, %200 : vector<2x32xf32>
    %202 = vector.extract_strided_slice %185 {offsets = [14, 37], sizes = [2, 32], strides = [1, 1]} : vector<24x70xf32> to vector<2x32xf32>
    %203 = arith.addf %201, %202 : vector<2x32xf32>
    %204 = vector.extract_strided_slice %185 {offsets = [16, 38], sizes = [2, 32], strides = [1, 1]} : vector<24x70xf32> to vector<2x32xf32>
    %205 = arith.addf %203, %204 : vector<2x32xf32>
    %c0_136 = arith.constant 0 : index
    %c0_137 = arith.constant 0 : index
    %c256_138 = arith.constant 256 : index
    %206 = vector.load %arg7[%c0_136, %c0_137, %c256_138] : memref<1x2x288xf32, #tpu.memory_space<vmem>>, vector<1x2x32xf32>
    %207 = vector.shape_cast %206 : vector<1x2x32xf32> to vector<2x32xf32>
    %208 = vector.shape_cast %205 : vector<2x32xf32> to vector<1x2x32xf32>
    tpu.vector_store %arg7[%c0_136, %c0_137, %c256_138], %208 {strides = array<i32>} : memref<1x2x288xf32, #tpu.memory_space<vmem>>, vector<1x2x32xf32>,
    return
  }
  func.func @transform_0(%arg0: i32) -> (i32, i32, i32) {
    %c0_i32 = arith.constant 0 : i32
    %c0_i32_0 = arith.constant 0 : i32
    %c0_i32_1 = arith.constant 0 : i32
    return %arg0, %c0_i32, %c0_i32_0 : i32, i32, i32
  }
  func.func @transform_1(%arg0: i32) -> (i32, i32) {
    %c0_i32 = arith.constant 0 : i32
    %c0_i32_0 = arith.constant 0 : i32
    %c0_i32_1 = arith.constant 0 : i32
    return %c0_i32, %c0_i32_0 : i32, i32
  }
  func.func @transform_2(%arg0: i32) -> (i32, i32, i32) {
    %c0_i32 = arith.constant 0 : i32
    %c0_i32_0 = arith.constant 0 : i32
    %c0_i32_1 = arith.constant 0 : i32
    %c0_i32_2 = arith.constant 0 : i32
    return %c0_i32, %c0_i32_0, %c0_i32_1 : i32, i32, i32
  }
  func.func @transform_3(%arg0: i32) -> (i32, i32) {
    %c0_i32 = arith.constant 0 : i32
    %c0_i32_0 = arith.constant 0 : i32
    %c0_i32_1 = arith.constant 0 : i32
    return %c0_i32, %c0_i32_0 : i32, i32
  }
  func.func @transform_4(%arg0: i32) -> (i32, i32) {
    %c0_i32 = arith.constant 0 : i32
    %c0_i32_0 = arith.constant 0 : i32
    %c0_i32_1 = arith.constant 0 : i32
    return %c0_i32, %c0_i32_0 : i32, i32
  }
  func.func @transform_5(%arg0: i32) -> (i32, i32) {
    %c0_i32 = arith.constant 0 : i32
    %c0_i32_0 = arith.constant 0 : i32
    %c0_i32_1 = arith.constant 0 : i32
    return %c0_i32, %c0_i32_0 : i32, i32
  }
  func.func @transform_6(%arg0: i32) -> (i32, i32, i32) {
    %c0_i32 = arith.constant 0 : i32
    %c0_i32_0 = arith.constant 0 : i32
    %c0_i32_1 = arith.constant 0 : i32
    return %arg0, %c0_i32, %c0_i32_0 : i32, i32, i32
  }
}

</mosaic_0001>

<bundles_post_ra>
// kernel: tpu_custom_call.1
= control target key start
LH: loop header
LB: loop body
LE: loop exit
PB: predicated region body
PF: predicated region fallthrough
CT: control target
= control target key end

     0   :  { %11 = vsyncpa [#allocation4], 0  ;;  %s5588_s0 = inlined_call_operand.vmem [shape: bf16[2,32,342], index: 0, kind: input, shape index: {}]   ;;  %s5589_s1 = inlined_call_operand.vmem [shape: bf16[1,288], index: 1, kind: input, shape index: {}]   ;;  %s5590_s2 = inlined_call_operand.vmem [shape: bf16[9,64,32], index: 2, kind: input, shape index: {}]   ;;  %s5591_s3 = inlined_call_operand.vmem [shape: f32[64,1], index: 3, kind: input, shape index: {}]   ;;  %s5592_s4 = inlined_call_operand.vmem [shape: bf16[24,64], index: 4, kind: input, shape index: {}]   ;;  %s5593_s5 = inlined_call_operand.vmem [shape: f32[2,1], index: 5, kind: input, shape index: {}]   ;;  %s5594_s6 = inlined_call_operand.hbm [shape: f32[2,2,288], index: 6, kind: output, shape index: {}]  }
   0x1   :  { %13 = vsyncpa [#allocation4 + $0x1], 0  ;;  %s4462_s21 = smov 0   ;;  %s4464_s22 = smov 0  }
   0x2   :  { %s4466_s23 = smov 0   ;;  %s4468_s24 = smov 0  }
   0x3 LB: > { %s4483_s25 = sadd.s32 4294967295, %s4413_s24   ;;  %s3658_s26 = sadd.s32 4294967294, %s4413_s24   ;;  %s4413_s24 = sphi %s4468_s24, %s5622_s24   ;;  %s4409_s23 = sphi %s4466_s23, %s5621_s23   ;;  %s4405_s22 = sphi %s4464_s22, %s5620_s22   ;;  %s4401_s21 = sphi %s4462_s21, %s5619_s21  }
   0x4   : > { %s4487_s27 = sadd.s32 1, %s4413_s24   ;;  %s157_s28 = sadd.s32 1, %s4409_s23 }
   0x5   : > { %s154_s29 = ssub.s32 %s4413_s24, %s4487_s27  ;;  %p167_p0 = scmp.ne.s32.totalorder %s4409_s23, %s4405_s22 }
   0x6   : > { %p155_p1 = scmp.eq.s32.totalorder %s154_s29, 0  ;;  %p168_p2 = scmp.eq.s32.totalorder %s4483_s25, 1 }
   0x7   : > { %p173_p3 = scmp.ne.s32.totalorder %s4405_s22, %s4401_s21  ;;  %p174_p4 = scmp.eq.s32.totalorder %s3658_s26, 1 }
   0x8   : > { %s4498_s30 = scalar_select %p155_p1, %s4409_s23, %s157_s28  }
   0x9   : > { %p4500_p5 = por %p168_p2, %p167_p0  ;;  %p4504_p6 = por %p174_p4, %p173_p3 }
   0xa   : > { %p3661_p7 = scmp.ge.s32.totalorder %s4413_s24, 1  ;;  %p215_p8 = scmp.lt.s32.totalorder %s4413_s24, 3 }
   0xc   : > { %p216_p9 = pnand %p3661_p7, %p215_p8 }
   0xe   : > { %219 = sbr.rel (%p216_p9) target bundleno = 1060 (0x424), region = 44 }
  0x13   : > { %p245_p10 = scmp.lt.s32.totalorder %s4483_s25, 1  ;;  %v5597_v0 = vmov 0   ;;  %s4416_s14 = smov 127   ;;  %v4255_v6 = vld [vmem:[%s5590_s2] sm:$0xff]   ;;  %vm370_vm0 = vcmask 261120   ;;  %v4256_v8 = vld [vmem:[%s5590_s2 + $0x8] sm:$0xff]  }
  0x14   : > { %415 = vmatprep.mubr.bf16.mxu0 %v5597_v0  ;;  %600 = vmatprep.mubr.bf16.mxu1 %v5597_v0  ;;  %s4417_s17 = smov 126   ;;  %v4257_v9 = vld [vmem:[%s5590_s2 + $0x10] sm:$0xff]   ;;  %s4418_s28 = smov 110   ;;  %v4259_v10 = vld [vmem:[%s5590_s2 + $0x18] sm:$0xff]   ;;  %vm547_vm1 = vcmask 1039360   ;;  %v4258_v23 = vld [vmem:[%s5590_s2 + $0x20] sm:$0xff]  }
  0x15   : > { %s246_s9 = scalar_select %p245_p10, %s4483_s25, 1  ;;  %4246 = vset.pattern.permute.xlu1 %v5597_v0  ;;  %4245 = vset.pattern.permute.xlu0 %v5597_v0  ;;  %vm698_vm2 = vcmask 1031168   ;;  %v276_v24 = vld [vmem:[%s5591_s3 + $0x30] sm:$0xff]  ;;  %v277_v27 = vld [vmem:[%s5591_s3 + $0x38] sm:$0xff]  ;;  %v275_v29 = vld [vmem:[%s5591_s3 + $0x28] sm:$0xff]  ;;  %vm849_vm3 = vcmask 900096  }
  0x16   : > { %s4420_s11 = smov 108   ;;  %s4421_s12 = smov 92   ;;  %v274_v33 = vld [vmem:[%s5591_s3 + $0x20] sm:$0xff]  ;;  %v4260_v34 = vld [vmem:[%s5590_s2 + $0x28] sm:$0xff]   ;;  %v273_v38 = vld [vmem:[%s5591_s3 + $0x18] sm:$0xff]  ;;  %vm1000_vm4 = vcmask 891904  }
  0x17   : > { %s4193_s10 = smul.u32 48, %s246_s9  ;;  %s4422_s15 = smov 91   ;;  %v272_v39 = vld [vmem:[%s5591_s3 + $0x10] sm:$0xff]  ;;  %v4261_v41 = vld [vmem:[%s5590_s2 + $0x40] sm:$0xff]   ;;  %v271_v44 = vld [vmem:[%s5591_s3 + $0x8] sm:$0xff]  ;;  %vm1151_vm5 = vcmask 883712  }
  0x18   : > { %s5595_s16 = smov 90   ;;  %v270_v45 = vld [vmem:[%s5591_s3] sm:$0xff]  ;;  %v4263_v47 = vld [vmem:[%s5590_s2 + $0x30] sm:$0xff]   ;;  %v4264_v51 = vld [vmem:[%s5590_s2 + $0x48] sm:$0xff]   ;;  %vm1302_vm6 = vcmask 752640   ;;  %vm1453_vm7 = vcmask 744448  }
  0x19   : > { %s4519_s13 = scalar_lea.vmem %s5588_s0, %s4193_s10  ;;  %s4419_s10 = smov 109   ;;  %v4265_v55 = vld [vmem:[%s5590_s2 + $0x38] sm:$0xff]   ;;  %v4267_v59 = vld [vmem:[%s5590_s2 + $0x50] sm:$0xff]   ;;  %vm1604_vm8 = vcmask 736256   ;;  %vm251_vm9 = vcmask 150528   ;;  %vm260_vm10 = vcmask 699800  }
  0x1a   : > { %v4522_v1 = vld [vmem:[%s4519_s13 + $0x1c] ss:$12 sps:$4 sm:$0xff]   ;;  %v4525_v2 = vld [vmem:[%s4519_s13 + $0x18] ss:$12 sps:$4 sm:$0xff]   ;;  %v4530_v3 = vld [vmem:[%s4519_s13 + $0x20] ss:$12 sps:$4 sm:$0xff]  }
  0x1b   : > { %543 = vrot.lane.b32.xlu0 %v4522_v1, %s4416_s14  ;;  %395 = vmatprep.subr.bf16.mxu0 %v4522_v1  ;;  %v4536_v4 = vld [vmem:[%s4519_s13 + $0x4] ss:$12 sps:$4 sm:$0xff]   ;;  %v4540_v5 = vld [vmem:[%s4519_s13 + $0x8] ss:$12 sps:$4 sm:$0xff]   ;;  %v4546_v7 = vld [vmem:[%s4519_s13] ss:$12 sps:$4 sm:$0xff]  }
  0x1c   : > { %541 = vrot.lane.b32.xlu1 %v4525_v2, %s4416_s14  ;;  %396 = vmatpush1.bf16.msra.mxu0 %v4525_v2  ;;  %v4658_v11 = vld [vmem:[%s4519_s13 + $0x20] ss:$12 sps:$4 sm:$0xff]   ;;  %v4665_v12 = vld [vmem:[%s4519_s13 + $0x8] ss:$12 sps:$4 sm:$0xff]   ;;  %259 = vst.msk [vmem:[#allocation2 + $0x54] sm:$0xf] %vm251_vm9, %v5597_v0 }
  0x1d   : > { %397 = vmatprep.subr.bf16.mxu0 %v4536_v4  ;;  %252 = vst.msk [vmem:[#allocation2] sm:$0xf] %vm251_vm9, %v5597_v0  ;;  %253 = vst.msk [vmem:[#allocation2 + $0xc] sm:$0xf] %vm251_vm9, %v5597_v0  ;;  %s4425_s20 = smov 19   ;;  %vm3180_vm11 = vcmask 523264  }
  0x1e   : > { %254 = vst.msk [vmem:[#allocation2 + $0x18] sm:$0xf] %vm251_vm9, %v5597_v0  ;;  %255 = vst.msk [vmem:[#allocation2 + $0x24] sm:$0xf] %vm251_vm9, %v5597_v0  ;;  %vm1864_vm12 = vcmask 1043608   ;;  %vm1865_vm13 = vcmask 1047556  }
  0x1f   : > { %545 = vrot.lane.b32.xlu0 %v4530_v3, %s4416_s14  ;;  %256 = vst.msk [vmem:[#allocation2 + $0x30] sm:$0xf] %vm251_vm9, %v5597_v0  ;;  %257 = vst.msk [vmem:[#allocation2 + $0x3c] sm:$0xf] %vm251_vm9, %v5597_v0  ;;  %vm1839_vm14 = vcmask 154624   ;;  %s5618_s19 = smov 90  }
  0x20   : > { %537 = vrot.lane.b32.xlu1 %v4536_v4, %s4416_s14  ;;  %398 = vmatpush1.bf16.msra.mxu0 %v4546_v7  ;;  %258 = vst.msk [vmem:[#allocation2 + $0x48] sm:$0xf] %vm251_vm9, %v5597_v0  ;;  %vm5424_vm15 = vmor %vm1865_vm13, %vm1864_vm12 }
  0x23   : > { %539 = vrot.lane.b32.xlu0 %v4540_v5, %s4416_s14  ;;  %3671 = vmatmul.mubr.msk.bf16.vlgmr.msra.gmra.mxu0 %vm370_vm0, %v4255_v6 }
  0x24   : > { %535 = vrot.lane.b32.xlu1 %v4546_v7, %s4416_s14  ;;  %425 = vmatprep.mubr.bf16.mxu0 %v5597_v0 }
  0x27   : > { %694 = vrot.lane.b32.xlu0 %v4522_v1, %s4417_s17 }
  0x28   : > { %696 = vrot.lane.b32.xlu1 %v4530_v3, %s4417_s17 }
  0x2b   : > { %692 = vrot.lane.b32.xlu0 %v4525_v2, %s4417_s17  ;;  %3672 = vmatmul.mubr.msk.bf16.gmra.mxu0 %vm370_vm0, %v4256_v8 }
  0x2c   : > { %688 = vrot.lane.b32.xlu1 %v4536_v4, %s4417_s17  ;;  %435 = vmatprep.mubr.bf16.mxu0 %v5597_v0 }
  0x2f   : > { %690 = vrot.lane.b32.xlu0 %v4540_v5, %s4417_s17 }
  0x30   : > { %686 = vrot.lane.b32.xlu1 %v4546_v7, %s4417_s17 }
  0x33   : > { %845 = vrot.lane.b32.xlu0 %v4522_v1, %s4418_s28  ;;  %3673 = vmatmul.mubr.msk.bf16.gmra.mxu0 %vm370_vm0, %v4257_v9  ;;  %v4270_v9 = vld [vmem:[%s5590_s2 + $0x68] sm:$0xff]  }
  0x34   : > { %847 = vrot.lane.b32.xlu1 %v4530_v3, %s4418_s28  ;;  %445 = vmatprep.mubr.bf16.mxu0 %v5597_v0 }
  0x37   : > { %843 = vrot.lane.b32.xlu0 %v4525_v2, %s4418_s28 }
  0x38   : > { %839 = vrot.lane.b32.xlu1 %v4536_v4, %s4418_s28 }
  0x3b   : > { %841 = vrot.lane.b32.xlu0 %v4540_v5, %s4418_s28  ;;  %3674 = vmatmul.mubr.msk.bf16.gmra.mxu0 %vm370_vm0, %v4259_v10 }
  0x3c   : > { %837 = vrot.lane.b32.xlu1 %v4546_v7, %s4418_s28  ;;  %751 = vmatprep.mubr.bf16.mxu0 %v5597_v0 }
  0x3f   : > { %996 = vrot.lane.b32.xlu0 %v4522_v1, %s4419_s10 }
  0x40   : > { %998 = vrot.lane.b32.xlu1 %v4530_v3, %s4419_s10 }
  0x43   : > { %994 = vrot.lane.b32.xlu0 %v4525_v2, %s4419_s10 }
  0x44   : > { %990 = vrot.lane.b32.xlu1 %v4536_v4, %s4419_s10 }
  0x47   : > { %992 = vrot.lane.b32.xlu0 %v4540_v5, %s4419_s10 }
  0x48   : > { %988 = vrot.lane.b32.xlu1 %v4546_v7, %s4419_s10 }
  0x4b   : > { %1147 = vrot.lane.b32.xlu0 %v4522_v1, %s4420_s11 }
  0x4c   : > { %1149 = vrot.lane.b32.xlu1 %v4530_v3, %s4420_s11 }
  0x4f   : > { %1145 = vrot.lane.b32.xlu0 %v4525_v2, %s4420_s11 }
  0x50   : > { %1141 = vrot.lane.b32.xlu1 %v4536_v4, %s4420_s11 }
  0x53   : > { %1143 = vrot.lane.b32.xlu0 %v4540_v5, %s4420_s11 }
  0x54   : > { %1139 = vrot.lane.b32.xlu1 %v4546_v7, %s4420_s11 }
  0x57   : > { %1298 = vrot.lane.b32.xlu0 %v4522_v1, %s4421_s12 }
  0x58   : > { %1300 = vrot.lane.b32.xlu1 %v4530_v3, %s4421_s12 }
  0x5b   : > { %1296 = vrot.lane.b32.xlu0 %v4525_v2, %s4421_s12 }
  0x5c   : > { %1292 = vrot.lane.b32.xlu1 %v4536_v4, %s4421_s12 }
  0x5f   : > { %1294 = vrot.lane.b32.xlu0 %v4540_v5, %s4421_s12 }
  0x60   : > { %1290 = vrot.lane.b32.xlu1 %v4546_v7, %s4421_s12 }
  0x63   : > { %1449 = vrot.lane.b32.xlu0 %v4522_v1, %s4422_s15 }
  0x64   : > { %1451 = vrot.lane.b32.xlu1 %v4530_v3, %s4422_s15 }
  0x67   : > { %1447 = vrot.lane.b32.xlu0 %v4525_v2, %s4422_s15 }
  0x68   : > { %1443 = vrot.lane.b32.xlu1 %v4536_v4, %s4422_s15 }
  0x6b   : > { %1445 = vrot.lane.b32.xlu0 %v4540_v5, %s4422_s15 }
  0x6c   : > { %1441 = vrot.lane.b32.xlu1 %v4546_v7, %s4422_s15 }
  0x6f   : > { %1600 = vrot.lane.b32.xlu0 %v4522_v1, %s5595_s16  ;;  %v4268_v1 = vld [vmem:[%s5590_s2 + $0x60] sm:$0xff]  }
  0x70   : > { %1602 = vrot.lane.b32.xlu1 %v4530_v3, %s5595_s16 }
  0x73   : > { %1598 = vrot.lane.b32.xlu0 %v4525_v2, %s5595_s16 }
  0x74   : > { %1594 = vrot.lane.b32.xlu1 %v4536_v4, %s5595_s16 }
  0x77   : > { %1596 = vrot.lane.b32.xlu0 %v4540_v5, %s5595_s16  ;;  %v4269_v5 = vld [vmem:[%s5590_s2 + $0x58] sm:$0xff]  }
  0x78   : > { %1592 = vrot.lane.b32.xlu1 %v4546_v7, %s5595_s16 }
  0x7b   : > { %2091 = vrot.lane.b32.xlu0 %v4658_v11, %s4416_s14 }
  0x7c   : > { %2210 = vrot.lane.b32.xlu1 %v4658_v11, %s4417_s17 }
  0x7f   : > { %2089 = vrot.lane.b32.xlu0 %v4665_v12, %s4416_s14 }
  0x80   : > { %2208 = vrot.lane.b32.xlu1 %v4665_v12, %s4417_s17 }
  0x83   : > { %2329 = vrot.lane.b32.xlu0 %v4658_v11, %s4418_s28 }
  0x84   : > { %2448 = vrot.lane.b32.xlu1 %v4658_v11, %s4419_s10 }
  0x87   : > { %2327 = vrot.lane.b32.xlu0 %v4665_v12, %s4418_s28 }
  0x88   : > { %2446 = vrot.lane.b32.xlu1 %v4665_v12, %s4419_s10 }
  0x8b   : > { %2567 = vrot.lane.b32.xlu0 %v4658_v11, %s4420_s11 }
  0x8c   : > { %2686 = vrot.lane.b32.xlu1 %v4658_v11, %s4421_s12 }
  0x8d   : > { %v544_v13 = vpop.permute.xlu0 %543 }
  0x8e   : > { %v542_v14 = vpop.permute.xlu1 %541 }
  0x8f   : > { %2565 = vrot.lane.b32.xlu0 %v4665_v12, %s4420_s11  ;;  %v550_v18 = vsel %vm547_vm1, %v542_v14, %v544_v13 }
  0x90   : > { %2684 = vrot.lane.b32.xlu1 %v4665_v12, %s4421_s12 }
  0x91   : > { %v546_v15 = vpop.permute.xlu0 %545 }
  0x92   : > { %v538_v16 = vpop.permute.xlu1 %537  ;;  %v551_v17 = vsel %vm547_vm1, %v544_v13, %v546_v15 }
  0x93   : > { %580 = vmatprep.subr.bf16.mxu1 %v551_v17  ;;  %2805 = vrot.lane.b32.xlu0 %v4658_v11, %s4422_s15 }
  0x94   : > { %581 = vmatpush1.bf16.msra.mxu1 %v550_v18  ;;  %2924 = vrot.lane.b32.xlu1 %v4658_v11, %s5595_s16 }
  0x95   : > { %v540_v19 = vpop.permute.xlu0 %539 }
  0x96   : > { %v536_v20 = vpop.permute.xlu1 %535  ;;  %v549_v21 = vsel %vm547_vm1, %v538_v16, %v540_v19 }
  0x97   : > { %582 = vmatprep.subr.bf16.mxu1 %v549_v21  ;;  %v548_v22 = vsel %vm547_vm1, %v536_v20, %v538_v16  ;;  %2803 = vrot.lane.b32.xlu0 %v4665_v12, %s4422_s15  ;;  %v4271_v16 = vld [vmem:[%s5590_s2 + $0x80] sm:$0xff]   ;;  %v4272_v20 = vld [vmem:[%s5590_s2 + $0x70] sm:$0xff]  }
  0x98   : > { %583 = vmatpush1.bf16.msra.mxu1 %v548_v22  ;;  %2922 = vrot.lane.b32.xlu1 %v4665_v12, %s5595_s16 }
  0x99   : > { %v695_v25 = vpop.permute.xlu0 %694 }
  0x9a   : > { %v697_v26 = vpop.permute.xlu1 %696 }
  0x9b   : > { %3693 = vmatmul.mubr.msk.bf16.vlgmr.msra.gmra.mxu1 %vm370_vm0, %v4258_v23  ;;  %v702_v28 = vsel %vm698_vm2, %v695_v25, %v697_v26  ;;  %310 = vperm.xlu0 %4245, %v276_v24  }
  0x9c   : > { %731 = vmatprep.subr.bf16.mxu0 %v702_v28  ;;  %610 = vmatprep.mubr.bf16.mxu1 %v5597_v0 }
  0x9d   : > { %v693_v30 = vpop.permute.xlu0 %692  ;;  %315 = vperm.xlu1 %4246, %v277_v27  }
  0x9e   : > { %v701_v31 = vsel %vm698_vm2, %v693_v30, %v695_v25  ;;  %v689_v32 = vpop.permute.xlu1 %688 }
  0x9f   : > { %732 = vmatpush1.bf16.msra.mxu0 %v701_v31  ;;  %305 = vperm.xlu0 %4245, %v275_v29  }
  0xa1   : > { %v691_v35 = vpop.permute.xlu0 %690  ;;  %300 = vperm.xlu1 %4246, %v274_v33  }
  0xa2   : > { %v687_v36 = vpop.permute.xlu1 %686  ;;  %v700_v37 = vsel %vm698_vm2, %v689_v32, %v691_v35 }
  0xa3   : > { %v699_v40 = vsel %vm698_vm2, %v687_v36, %v689_v32  ;;  %3694 = vmatmul.mubr.msk.bf16.gmra.mxu1 %vm370_vm0, %v4260_v34  ;;  %733 = vmatprep.subr.bf16.mxu0 %v700_v37  ;;  %v4276_v37 = vld [vmem:[%s5590_s2 + $0xa0] sm:$0xff]  }
  0xa4   : > { %734 = vmatpush1.bf16.msra.mxu0 %v699_v40  ;;  %620 = vmatprep.mubr.bf16.mxu1 %v5597_v0 }
  0xa5   : > { %v846_v42 = vpop.permute.xlu0 %845  ;;  %295 = vperm.xlu0 %4245, %v273_v38   ;;  %290 = vperm.xlu1 %4246, %v272_v39  }
  0xa6   : > { %v848_v43 = vpop.permute.xlu1 %847 }
  0xa7   : > { %3709 = vmatmul.mubr.msk.bf16.vlgmr.msra.gmra.mxu0 %vm370_vm0, %v4261_v41  ;;  %v853_v46 = vsel %vm849_vm3, %v846_v42, %v848_v43 }
  0xa8   : > { %882 = vmatprep.subr.bf16.mxu1 %v853_v46  ;;  %761 = vmatprep.mubr.bf16.mxu0 %v5597_v0  ;;  %v4278_v46 = vld [vmem:[%s5590_s2 + $0xa8] sm:$0xff]  }
  0xa9   : > { %v844_v48 = vpop.permute.xlu0 %843  ;;  %285 = vperm.xlu0 %4245, %v271_v44   ;;  %280 = vperm.xlu1 %4246, %v270_v45  }
  0xaa   : > { %v852_v49 = vsel %vm849_vm3, %v844_v48, %v846_v42  ;;  %v840_v50 = vpop.permute.xlu1 %839  ;;  %v4277_v42 = vld [vmem:[%s5590_s2 + $0x98] sm:$0xff]  }
  0xab   : > { %3695 = vmatmul.mubr.msk.bf16.gmra.mxu1 %vm370_vm0, %v4263_v47 }
  0xac   : > { %883 = vmatpush1.bf16.msra.mxu1 %v852_v49  ;;  %630 = vmatprep.mubr.bf16.mxu1 %v5597_v0 }
  0xad   : > { %v842_v52 = vpop.permute.xlu0 %841  ;;  %1929 = vperm.xlu0 %4245, %v277_v27   ;;  %1924 = vperm.xlu1 %4246, %v276_v24   ;;  %v4273_v24 = vld [vmem:[%s5590_s2 + $0x88] sm:$0xff]  }
  0xae   : > { %v838_v53 = vpop.permute.xlu1 %837  ;;  %v851_v54 = vsel %vm849_vm3, %v840_v50, %v842_v52 }
  0xaf   : > { %3710 = vmatmul.mubr.msk.bf16.gmra.mxu0 %vm370_vm0, %v4264_v51  ;;  %v850_v56 = vsel %vm849_vm3, %v838_v53, %v840_v50  ;;  %884 = vmatprep.subr.bf16.mxu1 %v851_v54  ;;  %v4279_v50 = vld [vmem:[%s5590_s2 + $0xc0] sm:$0xff]  }
  0xb0   : > { %771 = vmatprep.mubr.bf16.mxu0 %v5597_v0  ;;  %885 = vmatpush1.bf16.msra.mxu1 %v850_v56 }
  0xb1   : > { %v997_v57 = vpop.permute.xlu0 %996  ;;  %1919 = vperm.xlu0 %4245, %v275_v29   ;;  %1914 = vperm.xlu1 %4246, %v274_v33   ;;  %v4274_v29 = vld [vmem:[%s5590_s2 + $0x78] sm:$0xff]   ;;  %v4275_v33 = vld [vmem:[%s5590_s2 + $0x90] sm:$0xff]  }
  0xb2   : > { %v999_v58 = vpop.permute.xlu1 %998 }
  0xb3   : > { %3696 = vmatmul.mubr.msk.bf16.gmra.mxu1 %vm370_vm0, %v4265_v55  ;;  %v1004_v60 = vsel %vm1000_vm4, %v997_v57, %v999_v58  ;;  %v4280_v55 = vld [vmem:[%s5590_s2 + $0xb0] sm:$0xff]  }
  0xb4   : > { %902 = vmatprep.mubr.bf16.mxu1 %v5597_v0  ;;  %1033 = vmatprep.subr.bf16.mxu0 %v1004_v60 }
  0xb5   : > { %v995_v61 = vpop.permute.xlu0 %994  ;;  %1909 = vperm.xlu0 %4245, %v273_v38   ;;  %1904 = vperm.xlu1 %4246, %v272_v39  }
  0xb6   : > { %v1003_v62 = vsel %vm1000_vm4, %v995_v61, %v997_v57  ;;  %v991_v63 = vpop.permute.xlu1 %990 }
  0xb7   : > { %3711 = vmatmul.mubr.msk.bf16.gmra.mxu0 %vm370_vm0, %v4267_v59  ;;  %v4281_v59 = vld [vmem:[%s5590_s2 + $0xc8] sm:$0xff]  }
  0xb8   : > { %1034 = vmatpush1.bf16.msra.mxu0 %v1003_v62  ;;  %781 = vmatprep.mubr.bf16.mxu0 %v5597_v0  ;;  %v4282_v62 = vld [vmem:[%s5590_s2 + $0xb8] sm:$0xff]  }
  0xb9   : > { %v993_v2 = vpop.permute.xlu0 %992  ;;  %1899 = vperm.xlu0 %4245, %v271_v44   ;;  %1894 = vperm.xlu1 %4246, %v270_v45  }
  0xba   : > { %v989_v3 = vpop.permute.xlu1 %988  ;;  %v1002_v4 = vsel %vm1000_vm4, %v991_v63, %v993_v2  ;;  %v4285_v2 = vld [vmem:[%s5590_s2 + $0xd8] sm:$0xff]  }
  0xbb   : > { %3725 = vmatmul.mubr.msk.bf16.vlgmr.msra.gmra.mxu1 %vm370_vm0, %v4268_v1  ;;  %v1001_v6 = vsel %vm1000_vm4, %v989_v3, %v991_v63  ;;  %1035 = vmatprep.subr.bf16.mxu0 %v1002_v4  ;;  %v4283_v63 = vld [vmem:[%s5590_s2 + $0xd0] sm:$0xff]   ;;  %v4284_v1 = vld [vmem:[%s5590_s2 + $0xe0] sm:$0xff]   ;;  %v4286_v4 = vld [vmem:[%s5590_s2 + $0xe8] sm:$0xff]  }
  0xbc   : > { %912 = vmatprep.mubr.bf16.mxu1 %v5597_v0  ;;  %1036 = vmatpush1.bf16.msra.mxu0 %v1001_v6  ;;  %v4288_v6 = vld [vmem:[%s5590_s2 + $0xf0] sm:$0xff]  }
  0xbd   : > { %v1148_v7 = vpop.permute.xlu0 %1147 }
  0xbe   : > { %v1150_v8 = vpop.permute.xlu1 %1149 }
  0xbf   : > { %3712 = vmatmul.mubr.msk.bf16.gmra.mxu0 %vm370_vm0, %v4269_v5  ;;  %v1155_v10 = vsel %vm1151_vm5, %v1148_v7, %v1150_v8  ;;  %v4290_v8 = vld [vmem:[%s5590_s2 + $0xf8] sm:$0xff]  }
  0xc0   : > { %1053 = vmatprep.mubr.bf16.mxu0 %v5597_v0  ;;  %1184 = vmatprep.subr.bf16.mxu1 %v1155_v10  ;;  %v4291_v10 = vld [vmem:[%s5590_s2 + $0x110] sm:$0xff]  }
  0xc1   : > { %v1146_v13 = vpop.permute.xlu0 %1145 }
  0xc2   : > { %v1154_v14 = vsel %vm1151_vm5, %v1146_v13, %v1148_v7  ;;  %v1142_v15 = vpop.permute.xlu1 %1141  ;;  %v4293_v13 = vld [vmem:[%s5590_s2 + $0x8] sm:$0xff]  }
  0xc3   : > { %3726 = vmatmul.mubr.msk.bf16.gmra.mxu1 %vm370_vm0, %v4270_v9  ;;  %v4292_v9 = vld [vmem:[%s5590_s2] sm:$0xff]  }
  0xc4   : > { %1185 = vmatpush1.bf16.msra.mxu1 %v1154_v14  ;;  %922 = vmatprep.mubr.bf16.mxu1 %v5597_v0  ;;  %v4295_v14 = vld [vmem:[%s5590_s2 + $0x10] sm:$0xff]  }
  0xc5   : > { %v1144_v17 = vpop.permute.xlu0 %1143 }
  0xc6   : > { %v1140_v18 = vpop.permute.xlu1 %1139  ;;  %v1153_v19 = vsel %vm1151_vm5, %v1142_v15, %v1144_v17  ;;  %v4299_v17 = vld [vmem:[%s5590_s2 + $0x40] sm:$0xff]  }
  0xc7   : > { %3741 = vmatmul.mubr.msk.bf16.vlgmr.msra.gmra.mxu0 %vm370_vm0, %v4271_v16  ;;  %v1152_v21 = vsel %vm1151_vm5, %v1140_v18, %v1142_v15  ;;  %1186 = vmatprep.subr.bf16.mxu1 %v1153_v19  ;;  %v4294_v16 = vld [vmem:[%s5590_s2 + $0x118] sm:$0xff]   ;;  %v4297_v19 = vld [vmem:[%s5590_s2 + $0x20] sm:$0xff]  }
  0xc8   : > { %1063 = vmatprep.mubr.bf16.mxu0 %v5597_v0  ;;  %1187 = vmatpush1.bf16.msra.mxu1 %v1152_v21  ;;  %v4296_v18 = vld [vmem:[%s5590_s2 + $0x18] sm:$0xff]   ;;  %v4300_v21 = vld [vmem:[%s5590_s2 + $0x48] sm:$0xff]  }
  0xc9   : > { %v1299_v22 = vpop.permute.xlu0 %1298 }
  0xca   : > { %v1301_v23 = vpop.permute.xlu1 %1300 }
  0xcb   : > { %3727 = vmatmul.mubr.msk.bf16.gmra.mxu1 %vm370_vm0, %v4272_v20  ;;  %v1306_v25 = vsel %vm1302_vm6, %v1299_v22, %v1301_v23 }
  0xcc   : > { %932 = vmatprep.mubr.bf16.mxu1 %v5597_v0  ;;  %1335 = vmatprep.subr.bf16.mxu0 %v1306_v25 }
  0xcd   : > { %v1297_v26 = vpop.permute.xlu0 %1296 }
  0xce   : > { %v1305_v27 = vsel %vm1302_vm6, %v1297_v26, %v1299_v22  ;;  %v1293_v28 = vpop.permute.xlu1 %1292  ;;  %v4303_v22 = vld [vmem:[%s5590_s2 + $0x50] sm:$0xff]  }
  0xcf   : > { %3742 = vmatmul.mubr.msk.bf16.gmra.mxu0 %vm370_vm0, %v4273_v24  ;;  %v4298_v24 = vld [vmem:[%s5590_s2 + $0x28] sm:$0xff]   ;;  %v4301_v26 = vld [vmem:[%s5590_s2 + $0x30] sm:$0xff]  }
  0xd0   : > { %1073 = vmatprep.mubr.bf16.mxu0 %v5597_v0  ;;  %1336 = vmatpush1.bf16.msra.mxu0 %v1305_v27 }
  0xd1   : > { %v1295_v30 = vpop.permute.xlu0 %1294 }
  0xd2   : > { %v1291_v31 = vpop.permute.xlu1 %1290  ;;  %v1304_v32 = vsel %vm1302_vm6, %v1293_v28, %v1295_v30  ;;  %v4307_v30 = vld [vmem:[%s5590_s2 + $0x80] sm:$0xff]  }
  0xd3   : > { %3728 = vmatmul.mubr.msk.bf16.gmra.mxu1 %vm370_vm0, %v4274_v29  ;;  %v1303_v34 = vsel %vm1302_vm6, %v1291_v31, %v1293_v28  ;;  %1337 = vmatprep.subr.bf16.mxu0 %v1304_v32  ;;  %v4304_v29 = vld [vmem:[%s5590_s2 + $0x58] sm:$0xff]  }
  0xd4   : > { %1204 = vmatprep.mubr.bf16.mxu1 %v5597_v0  ;;  %1338 = vmatpush1.bf16.msra.mxu0 %v1303_v34  ;;  %v4305_v34 = vld [vmem:[%s5590_s2 + $0x60] sm:$0xff]  }
  0xd5   : > { %v1450_v35 = vpop.permute.xlu0 %1449 }
  0xd6   : > { %v1452_v36 = vpop.permute.xlu1 %1451 }
  0xd7   : > { %3743 = vmatmul.mubr.msk.bf16.gmra.mxu0 %vm370_vm0, %v4275_v33  ;;  %v1457_v38 = vsel %vm1453_vm7, %v1450_v35, %v1452_v36  ;;  %v4302_v33 = vld [vmem:[%s5590_s2 + $0x38] sm:$0xff]  }
  0xd8   : > { %1083 = vmatprep.mubr.bf16.mxu0 %v5597_v0  ;;  %1486 = vmatprep.subr.bf16.mxu1 %v1457_v38 }
  0xd9   : > { %v1448_v39 = vpop.permute.xlu0 %1447 }
  0xda   : > { %v1456_v40 = vsel %vm1453_vm7, %v1448_v39, %v1450_v35  ;;  %v1444_v41 = vpop.permute.xlu1 %1443  ;;  %v4311_v39 = vld [vmem:[%s5590_s2 + $0x90] sm:$0xff]  }
  0xdb   : > { %3757 = vmatmul.mubr.msk.bf16.vlgmr.msra.gmra.mxu1 %vm370_vm0, %v4276_v37  ;;  %v4308_v37 = vld [vmem:[%s5590_s2 + $0x88] sm:$0xff]  }
  0xdc   : > { %1214 = vmatprep.mubr.bf16.mxu1 %v5597_v0  ;;  %1487 = vmatpush1.bf16.msra.mxu1 %v1456_v40 }
  0xdd   : > { %v1446_v43 = vpop.permute.xlu0 %1445 }
  0xde   : > { %v1442_v44 = vpop.permute.xlu1 %1441  ;;  %v1455_v45 = vsel %vm1453_vm7, %v1444_v41, %v1446_v43  ;;  %v4309_v43 = vld [vmem:[%s5590_s2 + $0x70] sm:$0xff]  }
  0xdf   : > { %3744 = vmatmul.mubr.msk.bf16.gmra.mxu0 %vm370_vm0, %v4277_v42  ;;  %v1454_v47 = vsel %vm1453_vm7, %v1442_v44, %v1444_v41  ;;  %1488 = vmatprep.subr.bf16.mxu1 %v1455_v45  ;;  %v4306_v41 = vld [vmem:[%s5590_s2 + $0x68] sm:$0xff]  }
  0xe0   : > { %1355 = vmatprep.mubr.bf16.mxu0 %v5597_v0  ;;  %1489 = vmatpush1.bf16.msra.mxu1 %v1454_v47  ;;  %v4315_v47 = vld [vmem:[%s5590_s2 + $0xc0] sm:$0xff]  }
  0xe1   : > { %v1601_v48 = vpop.permute.xlu0 %1600  ;;  %4060 = vmatprep.subr.bf16.mxu1 %v4658_v11 }
  0xe2   : > { %v1603_v49 = vpop.permute.xlu1 %1602 }
  0xe3   : > { %3758 = vmatmul.mubr.msk.bf16.gmra.mxu1 %vm370_vm0, %v4278_v46  ;;  %v1608_v51 = vsel %vm1604_vm8, %v1601_v48, %v1603_v49  ;;  %v4945_v23 = vpop.f32.mrf.mxu0  ;;  %v4312_v46 = vld [vmem:[%s5590_s2 + $0x98] sm:$0xff]  }
  0xe4   : > { %1224 = vmatprep.mubr.bf16.mxu1 %v5597_v0  ;;  %1637 = vmatprep.subr.bf16.mxu0 %v1608_v51 }
  0xe5   : > { %v1599_v52 = vpop.permute.xlu0 %1598  ;;  %v4955_v28 = vpop.f32.mrf.mxu0 }
  0xe6   : > { %v1607_v53 = vsel %vm1604_vm8, %v1599_v52, %v1601_v48  ;;  %v1595_v54 = vpop.permute.xlu1 %1594  ;;  %v4313_v52 = vld [vmem:[%s5590_s2 + $0xa0] sm:$0xff]  }
  0xe7   : > { %3773 = vmatmul.mubr.msk.bf16.vlgmr.msra.gmra.mxu0 %vm370_vm0, %v4279_v50  ;;  %v4965_v32 = vpop.f32.mrf.mxu0  ;;  %v4310_v50 = vld [vmem:[%s5590_s2 + $0x78] sm:$0xff]  }
  0xe8   : > { %1365 = vmatprep.mubr.bf16.mxu0 %v5597_v0  ;;  %1638 = vmatpush1.bf16.msra.mxu0 %v1607_v53 }
  0xe9   : > { %v1597_v56 = vpop.permute.xlu0 %1596  ;;  %v4975_v36 = vpop.f32.mrf.mxu0 }
  0xea   : > { %v1593_v57 = vpop.permute.xlu1 %1592  ;;  %v1606_v58 = vsel %vm1604_vm8, %v1595_v54, %v1597_v56  ;;  %v4319_v56 = vld [vmem:[%s5590_s2 + $0xd0] sm:$0xff]  }
  0xeb   : > { %3759 = vmatmul.mubr.msk.bf16.gmra.mxu1 %vm370_vm0, %v4280_v55  ;;  %v1605_v60 = vsel %vm1604_vm8, %v1593_v57, %v1595_v54  ;;  %1639 = vmatprep.subr.bf16.mxu0 %v1606_v58  ;;  %v4985_v40 = vpop.f32.mrf.mxu0  ;;  %v4316_v54 = vld [vmem:[%s5590_s2 + $0xc8] sm:$0xff]  }
  0xec   : > { %1234 = vmatprep.mubr.bf16.mxu1 %v5597_v0  ;;  %1640 = vmatpush1.bf16.msra.mxu0 %v1605_v60  ;;  %v4317_v60 = vld [vmem:[%s5590_s2 + $0xb0] sm:$0xff]  }
  0xed   : > { %v2092_v3 = vpop.permute.xlu0 %2091  ;;  %v4995_v45 = vpop.f32.mrf.mxu0 }
  0xee   : > { %v2211_v61 = vpop.permute.xlu1 %2210 }
  0xef   : > { %3774 = vmatmul.mubr.msk.bf16.gmra.mxu0 %vm370_vm0, %v4281_v59  ;;  %4084 = vmatprep.subr.bf16.mxu0 %v2211_v61  ;;  %v5005_v49 = vpop.f32.mrf.mxu0  ;;  %v4314_v59 = vld [vmem:[%s5590_s2 + $0xa8] sm:$0xff]  }
  0xf0   : > { %1375 = vmatprep.mubr.bf16.mxu0 %v5597_v0 }
  0xf1   : > { %v2090_v15 = vpop.permute.xlu0 %2089  ;;  %v5015_v53 = vpop.f32.mrf.mxu0 }
  0xf2   : > { %v2209_v5 = vpop.permute.xlu1 %2208 }
  0xf3   : > { %3760 = vmatmul.mubr.msk.bf16.gmra.mxu1 %vm370_vm0, %v4282_v62  ;;  %v5027_v58 = vpop.f32.mrf.mxu0 }
  0xf4   : > { %1506 = vmatprep.mubr.bf16.mxu1 %v5597_v0 }
  0xf5   : > { %v2330_v20 = vpop.permute.xlu0 %2329  ;;  %v5039_v62 = vpop.f32.mrf.mxu0 }
  0xf6   : > { %v2449_v7 = vpop.permute.xlu1 %2448 }
  0xf7   : > { %3775 = vmatmul.mubr.msk.bf16.gmra.mxu0 %vm370_vm0, %v4283_v63  ;;  %v4320_v63 = vld [vmem:[%s5590_s2 + $0xd8] sm:$0xff]  }
  0xf8   : > { %1385 = vmatprep.mubr.bf16.mxu0 %v5597_v0 }
  0xf9   : > { %v2328_v27 = vpop.permute.xlu0 %2327 }
  0xfa   : > { %v2447_v25 = vpop.permute.xlu1 %2446 }
  0xfb   : > { %3789 = vmatmul.mubr.msk.bf16.vlgmr.msra.gmra.mxu1 %vm370_vm0, %v4284_v1 }
  0xfc   : > { %1516 = vmatprep.mubr.bf16.mxu1 %v5597_v0  ;;  %4061 = vmatpush3.bf16.msra.mxu1 %v4658_v11  ;;  %v4287_v11 = vld [vmem:[%s5590_s2 + $0x100] sm:$0xff]  }
  0xfd   : > { %4062 = vmatprep.subr.bf16.mxu1 %v4665_v12  ;;  %v2568_v35 = vpop.permute.xlu0 %2567 }
  0xfe   : > { %v2687_v31 = vpop.permute.xlu1 %2686 }
  0xff   : > { %3776 = vmatmul.mubr.msk.bf16.gmra.mxu0 %vm370_vm0, %v4285_v2  ;;  %v4323_v2 = vld [vmem:[%s5590_s2 + $0x100] sm:$0xff]  }
 0x100   : > { %1657 = vmatprep.mubr.bf16.mxu0 %v5597_v0  ;;  %4063 = vmatpush3.bf16.msra.mxu1 %v4665_v12  ;;  %v4289_v12 = vld [vmem:[%s5590_s2 + $0x108] sm:$0xff]  }
 0x101   : > { %4072 = vmatprep.subr.bf16.mxu1 %v2092_v3  ;;  %v2566_v42 = vpop.permute.xlu0 %2565 }
 0x102   : > { %v2685_v38 = vpop.permute.xlu1 %2684 }
 0x103   : > { %3790 = vmatmul.mubr.msk.bf16.gmra.mxu1 %vm370_vm0, %v4286_v4  ;;  %v4318_v4 = vld [vmem:[%s5590_s2 + $0xb8] sm:$0xff]  }
 0x104   : > { %1526 = vmatprep.mubr.bf16.mxu1 %v5597_v0 }
 0x105   : > { %v2806_v48 = vpop.permute.xlu0 %2805 }
 0x106   : > { %v2925_v44 = vpop.permute.xlu1 %2924 }
 0x107   : > { %3805 = vmatmul.mubr.msk.bf16.vlgmr.msra.gmra.mxu0 %vm370_vm0, %v4287_v11 }
 0x108   : > { %1667 = vmatprep.mubr.bf16.mxu0 %v5597_v0  ;;  %4085 = vmatpush3.bf16.msra.mxu0 %v2211_v61 }
 0x109   : > { %4086 = vmatprep.subr.bf16.mxu0 %v2209_v5  ;;  %v2804_v55 = vpop.permute.xlu0 %2803 }
 0x10a   : > { %v2923_v51 = vpop.permute.xlu1 %2922 }
 0x10b   : > { %3791 = vmatmul.mubr.msk.bf16.gmra.mxu1 %vm370_vm0, %v4288_v6 }
 0x10c   : > { %1536 = vmatprep.mubr.bf16.mxu1 %v5597_v0  ;;  %4087 = vmatpush3.bf16.msra.mxu0 %v2209_v5  ;;  %v4321_v5 = vld [vmem:[%s5590_s2 + $0xe0] sm:$0xff]  }
 0x10d   : > { %4108 = vmatprep.subr.bf16.mxu0 %v2449_v7 }
 0x10f   : > { %3806 = vmatmul.mubr.msk.bf16.gmra.mxu0 %vm370_vm0, %v4289_v12 }
 0x110   : > { %1677 = vmatprep.mubr.bf16.mxu0 %v5597_v0 }
 0x113   : > { %3792 = vmatmul.mubr.msk.bf16.gmra.mxu1 %vm370_vm0, %v4290_v8  ;;  %v4327_v8 = vld [vmem:[%s5590_s2 + $0x110] sm:$0xff]  }
 0x114   : > { %4064 = vmatprep.mubr.msk.bf16.mxu1 %vm370_vm0, %v4292_v9 }
 0x116   : > { %v5037_v61 = vpop.permute.xlu0 %310 }
 0x117   : > { %3807 = vmatmul.mubr.msk.bf16.gmra.mxu0 %vm370_vm0, %v4291_v10 }
 0x118   : > { %1687 = vmatprep.mubr.bf16.mxu0 %v5597_v0  ;;  %v5025_v57 = vpop.permute.xlu1 %315 }
 0x11a   : > { %v5057_v11 = vpop.permute.xlu0 %305 }
 0x11b   : > { %4065 = vmatmul.mubr.msk.bf16.vlgmr.msra.gmra.mxu1 %vm370_vm0, %v4293_v13  ;;  %v4322_v13 = vld [vmem:[%s5590_s2 + $0xe8] sm:$0xff]  }
 0x11c   : > { %4068 = vmatprep.mubr.msk.bf16.mxu1 %vm370_vm0, %v4295_v14  ;;  %4073 = vmatpush3.bf16.msra.mxu1 %v2092_v3  ;;  %v5045_v1 = vpop.permute.xlu1 %300  ;;  %v5051_v3 = vpop.f32.mrf.mxu0 }
 0x11d   : > { %4074 = vmatprep.subr.bf16.mxu1 %v2090_v15 }
 0x11e   : > { %v443_v12 = vpop.f32.mrf.mxu0 }
 0x11f   : > { %3808 = vmatmul.mubr.msk.bf16.gmra.mxu0 %vm370_vm0, %v4294_v16 }
 0x120   : > { %4075 = vmatpush3.bf16.msra.mxu1 %v2090_v15  ;;  %4088 = vmatprep.mubr.msk.bf16.mxu0 %vm370_vm0, %v4299_v17  ;;  %v291_v6 = vpop.permute.xlu1 %290  ;;  %v296_v9 = vpop.permute.xlu0 %295  ;;  %v4325_v15 = vld [vmem:[%s5590_s2 + $0xf0] sm:$0xff]  }
 0x121   : > { %4096 = vmatprep.subr.bf16.mxu1 %v2330_v20  ;;  %v447_v10 = vpop.f32.mrf.mxu0 }
 0x123   : > { %4069 = vmatmul.mubr.msk.bf16.gmra.mxu1 %vm370_vm0, %v4296_v18  ;;  %v449_v17 = vpop.f32.mrf.mxu0 }
 0x124   : > { %4076 = vmatprep.mubr.msk.bf16.mxu1 %vm370_vm0, %v4297_v19  ;;  %v281_v14 = vpop.permute.xlu1 %280  ;;  %v5081_v19 = vpop.permute.xlu0 %285 }
 0x125   : > { %v456_v16 = vadd.f32 %v4945_v23, %v281_v14 }
 0x127   : > { %4089 = vmatmul.mubr.msk.bf16.vlgmr.msra.gmra.mxu0 %vm370_vm0, %v4300_v21  ;;  %v457_v21 = vadd.f32 %v4955_v28, %v281_v14  ;;  %v460_v28 = vadd.f32 %v4985_v40, %v291_v6  ;;  %v469_v14 = vadd.f32 %v449_v17, %v5037_v61 }
 0x128   : > { %4092 = vmatprep.mubr.msk.bf16.mxu0 %vm370_vm0, %v4303_v22  ;;  %4109 = vmatpush3.bf16.msra.mxu0 %v2449_v7  ;;  %v4324_v7 = vld [vmem:[%s5590_s2 + $0x108] sm:$0xff]  }
 0x129   : > { %4110 = vmatprep.subr.bf16.mxu0 %v2447_v25 }
 0x12b   : > { %4077 = vmatmul.mubr.msk.bf16.vlgmr.msra.gmra.mxu1 %vm370_vm0, %v4298_v24 }
 0x12c   : > { %4080 = vmatprep.mubr.msk.bf16.mxu1 %vm370_vm0, %v4301_v26  ;;  %4097 = vmatpush3.bf16.msra.mxu1 %v2330_v20  ;;  %v4328_v20 = vld [vmem:[%s5590_s2 + $0x118] sm:$0xff]  }
 0x12d   : > { %4098 = vmatprep.subr.bf16.mxu1 %v2328_v27  ;;  %4111 = vmatpush3.bf16.msra.mxu0 %v2447_v25  ;;  %v458_v25 = vadd.f32 %v4965_v32, %v5081_v19  ;;  %v461_v32 = vadd.f32 %v4995_v45, %v291_v6 }
 0x12e   : > { %4132 = vmatprep.subr.bf16.mxu0 %v2687_v31 }
 0x12f   : > { %4093 = vmatmul.mubr.msk.bf16.gmra.mxu0 %vm370_vm0, %v4304_v29  ;;  %v4326_v29 = vld [vmem:[%s5590_s2 + $0xf8] sm:$0xff]  }
 0x130   : > { %4099 = vmatpush3.bf16.msra.mxu1 %v2328_v27  ;;  %4112 = vmatprep.mubr.msk.bf16.mxu0 %vm370_vm0, %v4307_v30  ;;  %v451_v27 = vpop.f32.mrf.mxu0 }
 0x131   : > { %4120 = vmatprep.subr.bf16.mxu1 %v2568_v35 }
 0x133   : > { %4081 = vmatmul.mubr.msk.bf16.gmra.mxu1 %vm370_vm0, %v4302_v33 }
 0x134   : > { %4100 = vmatprep.mubr.msk.bf16.mxu1 %vm370_vm0, %v4305_v34  ;;  %v5098_v34 = vpop.f32.mrf.mxu0 }
 0x137   : > { %4113 = vmatmul.mubr.msk.bf16.vlgmr.msra.gmra.mxu0 %vm370_vm0, %v4308_v37 }
 0x138   : > { %4116 = vmatprep.mubr.msk.bf16.mxu0 %vm370_vm0, %v4311_v39  ;;  %4133 = vmatpush3.bf16.msra.mxu0 %v2687_v31 }
 0x139   : > { %4134 = vmatprep.subr.bf16.mxu0 %v2685_v38 }
 0x13b   : > { %4101 = vmatmul.mubr.msk.bf16.vlgmr.msra.gmra.mxu1 %vm370_vm0, %v4306_v41 }
 0x13c   : > { %4104 = vmatprep.mubr.msk.bf16.mxu1 %vm370_vm0, %v4309_v43  ;;  %4121 = vmatpush3.bf16.msra.mxu1 %v2568_v35  ;;  %v463_v43 = vadd.f32 %v5015_v53, %v296_v9  ;;  %v466_v53 = vadd.f32 %v5051_v3, %v5057_v11 }
 0x13d   : > { %4122 = vmatprep.subr.bf16.mxu1 %v2566_v42  ;;  %4135 = vmatpush3.bf16.msra.mxu0 %v2685_v38  ;;  %v462_v38 = vadd.f32 %v5005_v49, %v296_v9 }
 0x13e   : > { %4156 = vmatprep.subr.bf16.mxu0 %v2925_v44 }
 0x13f   : > { %4117 = vmatmul.mubr.msk.bf16.gmra.mxu0 %vm370_vm0, %v4312_v46 }
 0x140   : > { %4123 = vmatpush3.bf16.msra.mxu1 %v2566_v42  ;;  %4136 = vmatprep.mubr.msk.bf16.mxu0 %vm370_vm0, %v4315_v47 }
 0x141   : > { %4144 = vmatprep.subr.bf16.mxu1 %v2806_v48 }
 0x143   : > { %4105 = vmatmul.mubr.msk.bf16.gmra.mxu1 %vm370_vm0, %v4310_v50 }
 0x144   : > { %4124 = vmatprep.mubr.msk.bf16.mxu1 %vm370_vm0, %v4313_v52 }
 0x147   : > { %4137 = vmatmul.mubr.msk.bf16.vlgmr.msra.gmra.mxu0 %vm370_vm0, %v4316_v54  ;;  %v465_v54 = vadd.f32 %v5039_v62, %v5045_v1 }
 0x148   : > { %4140 = vmatprep.mubr.msk.bf16.mxu0 %vm370_vm0, %v4319_v56  ;;  %4157 = vmatpush3.bf16.msra.mxu0 %v2925_v44 }
 0x149   : > { %4158 = vmatprep.subr.bf16.mxu0 %v2923_v51 }
 0x14b   : > { %4125 = vmatmul.mubr.msk.bf16.vlgmr.msra.gmra.mxu1 %vm370_vm0, %v4314_v59 }
 0x14c   : > { %4128 = vmatprep.mubr.msk.bf16.mxu1 %vm370_vm0, %v4317_v60  ;;  %4145 = vmatpush3.bf16.msra.mxu1 %v2806_v48  ;;  %v464_v48 = vadd.f32 %v5027_v58, %v5045_v1 }
 0x14d   : > { %4146 = vmatprep.subr.bf16.mxu1 %v2804_v55  ;;  %4159 = vmatpush3.bf16.msra.mxu0 %v2923_v51 }
 0x14f   : > { %4141 = vmatmul.mubr.msk.bf16.gmra.mxu0 %vm370_vm0, %v4320_v63 }
 0x150   : > { %4147 = vmatpush3.bf16.msra.mxu1 %v2804_v55  ;;  %4160 = vmatprep.mubr.msk.bf16.mxu0 %vm370_vm0, %v4323_v2 }
 0x153   : > { %4129 = vmatmul.mubr.msk.bf16.gmra.mxu1 %vm370_vm0, %v4318_v4  ;;  %v467_v4 = vadd.f32 %v443_v12, %v5057_v11 }
 0x154   : > { %4148 = vmatprep.mubr.msk.bf16.mxu1 %vm370_vm0, %v4321_v5 }
 0x157   : > { %4161 = vmatmul.mubr.msk.bf16.vlgmr.msra.gmra.mxu0 %vm370_vm0, %v4324_v7 }
 0x158   : > { %4164 = vmatprep.mubr.msk.bf16.mxu0 %vm370_vm0, %v4327_v8  ;;  %v468_v8 = vadd.f32 %v447_v10, %v5037_v61  ;;  %v459_v61 = vadd.f32 %v4975_v36, %v5081_v19 }
 0x15b   : > { %v602_v18 = vpop.f32.mrf.mxu1  ;;  %4149 = vmatmul.mubr.msk.bf16.vlgmr.msra.gmra.mxu1 %vm370_vm0, %v4322_v13 }
 0x15c   : > { %4152 = vmatprep.mubr.msk.bf16.mxu1 %vm370_vm0, %v4325_v15  ;;  %v641_v22 = vadd.f32 %v602_v18, %v456_v16 }
 0x15d   : > { %v604_v24 = vpop.f32.mrf.mxu1 }
 0x15e   : > { %v642_v23 = vadd.f32 %v604_v24, %v457_v21 }
 0x15f   : > { %v606_v26 = vpop.f32.mrf.mxu1  ;;  %4165 = vmatmul.mubr.msk.bf16.gmra.mxu0 %vm370_vm0, %v4328_v20  ;;  %v470_v20 = vadd.f32 %v451_v27, %v5025_v57 }
 0x160   : > { %v643_v30 = vadd.f32 %v606_v26, %v458_v25 }
 0x161   : > { %v5094_v31 = vpop.f32.mrf.mxu1 }
 0x162   : > { %v644_v27 = vadd.f32 %v5094_v31, %v459_v61 }
 0x163   : > { %v612_v33 = vpop.f32.mrf.mxu1  ;;  %4153 = vmatmul.mubr.msk.bf16.gmra.mxu1 %vm370_vm0, %v4326_v29  ;;  %vm3080_vm0 = vcmask 412824  }
 0x164   : > { %v645_v35 = vadd.f32 %v612_v33, %v460_v28  ;;  %3219 = vmatprep.mubr.bf16.mxu1 %v5597_v0 }
 0x165   : > { %v614_v37 = vpop.f32.mrf.mxu1 }
 0x166   : > { %v646_v39 = vadd.f32 %v614_v37, %v461_v32 }
 0x167   : > { %v616_v41 = vpop.f32.mrf.mxu1  ;;  %v753_v42 = vpop.f32.mrf.mxu0 }
 0x168   : > { %v647_v44 = vadd.f32 %v616_v41, %v462_v38  ;;  %v792_v40 = vadd.f32 %v753_v42, %v641_v22 }
 0x169   : > { %v618_v46 = vpop.f32.mrf.mxu1  ;;  %v755_v47 = vpop.f32.mrf.mxu0 }
 0x16a   : > { %v648_v50 = vadd.f32 %v618_v46, %v463_v43  ;;  %v793_v45 = vadd.f32 %v755_v47, %v642_v23  ;;  %v471_v47 = vadd.f32 %v5098_v34, %v5025_v57 }
 0x16b   : > { %v622_v51 = vpop.f32.mrf.mxu1  ;;  %v757_v52 = vpop.f32.mrf.mxu0 }
 0x16c   : > { %v649_v49 = vadd.f32 %v622_v51, %v464_v48  ;;  %v794_v55 = vadd.f32 %v757_v52, %v643_v30 }
 0x16d   : > { %v624_v56 = vpop.f32.mrf.mxu1  ;;  %v759_v59 = vpop.f32.mrf.mxu0 }
 0x16e   : > { %v650_v60 = vadd.f32 %v624_v56, %v465_v54  ;;  %v795_v41 = vadd.f32 %v759_v59, %v644_v27 }
 0x16f   : > { %v626_v63 = vpop.f32.mrf.mxu1  ;;  %v763_v2 = vpop.f32.mrf.mxu0 }
 0x170   : > { %v651_v58 = vadd.f32 %v626_v63, %v466_v53  ;;  %v796_v5 = vadd.f32 %v763_v2, %v645_v35 }
 0x171   : > { %v628_v6 = vpop.f32.mrf.mxu1  ;;  %v765_v7 = vpop.f32.mrf.mxu0 }
 0x172   : > { %v652_v9 = vadd.f32 %v628_v6, %v467_v4  ;;  %v797_v62 = vadd.f32 %v765_v7, %v646_v39 }
 0x173   : > { %v632_v1 = vpop.f32.mrf.mxu1  ;;  %v767_v13 = vpop.f32.mrf.mxu0 }
 0x174   : > { %v653_v15 = vadd.f32 %v632_v1, %v468_v8  ;;  %v798_v16 = vadd.f32 %v767_v13, %v647_v44 }
 0x175   : > { %v634_v3 = vpop.f32.mrf.mxu1  ;;  %v769_v18 = vpop.f32.mrf.mxu0 }
 0x176   : > { %v654_v21 = vadd.f32 %v634_v3, %v469_v14  ;;  %v799_v11 = vadd.f32 %v769_v18, %v648_v50 }
 0x177   : > { %v636_v12 = vpop.f32.mrf.mxu1  ;;  %v773_v22 = vpop.f32.mrf.mxu0 }
 0x178   : > { %v655_v24 = vadd.f32 %v636_v12, %v470_v20  ;;  %v800_v25 = vadd.f32 %v773_v22, %v649_v49 }
 0x179   : > { %v638_v23 = vpop.f32.mrf.mxu1  ;;  %v775_v10 = vpop.f32.mrf.mxu0 }
 0x17a   : > { %v801_v26 = vadd.f32 %v775_v10, %v650_v60  ;;  %v656_v50 = vadd.f32 %v638_v23, %v471_v47 }
 0x17b   : > { %v777_v29 = vpop.f32.mrf.mxu0  ;;  %v904_v30 = vpop.f32.mrf.mxu1 }
 0x17c   : > { %v802_v17 = vadd.f32 %v777_v29, %v651_v58  ;;  %v943_v28 = vadd.f32 %v904_v30, %v792_v40 }
 0x17d   : > { %v779_v33 = vpop.f32.mrf.mxu0  ;;  %v906_v32 = vpop.f32.mrf.mxu1 }
 0x17e   : > { %v803_v35 = vadd.f32 %v779_v33, %v652_v9  ;;  %v944_v37 = vadd.f32 %v906_v32, %v793_v45 }
 0x17f   : > { %v783_v38 = vpop.f32.mrf.mxu0  ;;  %v908_v39 = vpop.f32.mrf.mxu1 }
 0x180   : > { %v804_v42 = vadd.f32 %v783_v38, %v653_v15  ;;  %v945_v43 = vadd.f32 %v908_v39, %v794_v55 }
 0x181   : > { %v785_v44 = vpop.f32.mrf.mxu0  ;;  %v910_v46 = vpop.f32.mrf.mxu1 }
 0x182   : > { %v805_v48 = vadd.f32 %v785_v44, %v654_v21  ;;  %v946_v36 = vadd.f32 %v910_v46, %v795_v41 }
 0x183   : > { %v787_v19 = vpop.f32.mrf.mxu0  ;;  %v914_v40 = vpop.f32.mrf.mxu1 }
 0x184   : > { %v806_v51 = vadd.f32 %v787_v19, %v655_v24  ;;  %v947_v52 = vadd.f32 %v914_v40, %v796_v5 }
 0x185   : > { %v789_v31 = vpop.f32.mrf.mxu0  ;;  %v916_v54 = vpop.f32.mrf.mxu1 }
 0x186   : > { %v807_v45 = vadd.f32 %v789_v31, %v656_v50  ;;  %v948_v49 = vadd.f32 %v916_v54, %v797_v62 }
 0x187   : > { %v918_v56 = vpop.f32.mrf.mxu1  ;;  %v1055_v59 = vpop.f32.mrf.mxu0 }
 0x188   : > { %v949_v53 = vadd.f32 %v918_v56, %v798_v16  ;;  %v1094_v55 = vadd.f32 %v1055_v59, %v943_v28 }
 0x189   : > { %v920_v60 = vpop.f32.mrf.mxu1  ;;  %v1057_v63 = vpop.f32.mrf.mxu0 }
 0x18a   : > { %v950_v2 = vadd.f32 %v920_v60, %v799_v11  ;;  %v1095_v4 = vadd.f32 %v1057_v63, %v944_v37 }
 0x18b   : > { %v924_v57 = vpop.f32.mrf.mxu1  ;;  %v1059_v34 = vpop.f32.mrf.mxu0 }
 0x18c   : > { %v951_v58 = vadd.f32 %v924_v57, %v800_v25  ;;  %v1096_v6 = vadd.f32 %v1059_v34, %v945_v43 }
 0x18d   : > { %v926_v7 = vpop.f32.mrf.mxu1  ;;  %v1061_v8 = vpop.f32.mrf.mxu0 }
 0x18e   : > { %v952_v9 = vadd.f32 %v926_v7, %v801_v26  ;;  %v1097_v5 = vadd.f32 %v1061_v8, %v946_v36 }
 0x18f   : > { %v928_v1 = vpop.f32.mrf.mxu1  ;;  %v1065_v13 = vpop.f32.mrf.mxu0 }
 0x190   : > { %v953_v14 = vadd.f32 %v928_v1, %v802_v17  ;;  %v1098_v62 = vadd.f32 %v1065_v13, %v947_v52 }
 0x191   : > { %v930_v15 = vpop.f32.mrf.mxu1  ;;  %v1067_v3 = vpop.f32.mrf.mxu0 }
 0x192   : > { %v954_v16 = vadd.f32 %v930_v15, %v803_v35  ;;  %v1099_v18 = vadd.f32 %v1067_v3, %v948_v49 }
 0x193   : > { %v934_v20 = vpop.f32.mrf.mxu1  ;;  %v1069_v21 = vpop.f32.mrf.mxu0 }
 0x194   : > { %v5119_v11 = vadd.f32 %v934_v20, %v804_v42  ;;  %v1100_v12 = vadd.f32 %v1069_v21, %v949_v53  ;;  %v1750_v20 = vlaneseq }
 0x195   : > { %v936_v22 = vpop.f32.mrf.mxu1  ;;  %v1071_v24 = vpop.f32.mrf.mxu0 }
 0x196   : > { %v5121_v25 = vadd.f32 %v936_v22, %v805_v48  ;;  %v5123_v23 = vadd.f32 %v1071_v24, %v950_v2 }
 0x197   : > { %v938_v10 = vpop.f32.mrf.mxu1  ;;  %v1075_v26 = vpop.f32.mrf.mxu0 }
 0x198   : > { %v5125_v29 = vadd.f32 %v938_v10, %v806_v51  ;;  %v5127_v30 = vadd.f32 %v1075_v26, %v951_v58  ;;  %v1751_v26 = vshrl.u32 %v1750_v20, 7 }
 0x199   : > { %v940_v61 = vpop.f32.mrf.mxu1  ;;  %v1077_v17 = vpop.f32.mrf.mxu0 }
 0x19a   : > { %v5129_v28 = vadd.f32 %v940_v61, %v807_v45  ;;  %v5131_v33 = vadd.f32 %v1077_v17, %v952_v9 }
 0x19b   : > { %v1079_v32 = vpop.f32.mrf.mxu0  ;;  %v1206_v27 = vpop.f32.mrf.mxu1 }
 0x19c   : > { %v5133_v35 = vadd.f32 %v1079_v32, %v953_v14  ;;  %v1245_v37 = vadd.f32 %v1206_v27, %v1094_v55  ;;  %v3809_v32 = vld.sshfl [vmem:[%s5589_s1] sm:$0x11 pattern:$0x75316420] }
 0x19d   : > { %v1081_v38 = vpop.f32.mrf.mxu0  ;;  %v1208_v39 = vpop.f32.mrf.mxu1 }
 0x19e   : > { %v5135_v41 = vadd.f32 %v1081_v38, %v954_v16  ;;  %v1246_v42 = vadd.f32 %v1208_v39, %v1095_v4  ;;  %v4424_v16 = vmov 1966171168  }
 0x19f   : > { %v5137_v43 = vpop.f32.mrf.mxu0  ;;  %v1210_v44 = vpop.f32.mrf.mxu1 }
 0x1a0   : > { %v1247_v46 = vadd.f32 %v1210_v44, %v1096_v6  ;;  %v1746_v44 = vcombine.high %v3809_v32, %v3809_v32 }
 0x1a1   : > { %v5139_v47 = vpop.f32.mrf.mxu0  ;;  %v1212_v48 = vpop.f32.mrf.mxu1 }
 0x1a2   : > { %v1248_v36 = vadd.f32 %v1212_v48, %v1097_v5 }
 0x1a3   : > { %v5141_v19 = vpop.f32.mrf.mxu0  ;;  %v1216_v40 = vpop.f32.mrf.mxu1 }
 0x1a4   : > { %v5143_v50 = vadd.f32 %v1216_v40, %v1098_v62 }
 0x1a5   : > { %v5145_v51 = vpop.f32.mrf.mxu0  ;;  %v1218_v52 = vpop.f32.mrf.mxu1 }
 0x1a6   : > { %v5147_v31 = vadd.f32 %v1218_v52, %v1099_v18  ;;  %v1748_v18 = vunpack.c.l.s4 %v4424_v16  ;;  %v5210_v16 = vsub.s32 0, %v1751_v26 }
 0x1a7   : > { %v1220_v54 = vpop.f32.mrf.mxu1  ;;  %v1357_v45 = vpop.f32.mrf.mxu0 }
 0x1a8   : > { %v5149_v49 = vadd.f32 %v1220_v54, %v1100_v12  ;;  %v1396_v56 = vadd.f32 %v1357_v45, %v1245_v37  ;;  %v1749_v10 = vunpack.c.0.s8 %v1748_v18 }
 0x1a9   : > { %v5151_v59 = vpop.f32.mrf.mxu1  ;;  %v1359_v53 = vpop.f32.mrf.mxu0 }
 0x1aa   : > { %v1397_v55 = vadd.f32 %v1359_v53, %v1246_v42  ;;  %v1752_v38 = vsub.s32 %v1749_v10, %v1751_v26 }
 0x1ab   : > { %v5153_v60 = vpop.f32.mrf.mxu1  ;;  %v1361_v63 = vpop.f32.mrf.mxu0 }
 0x1ac   : > { %v1398_v2 = vadd.f32 %v1361_v63, %v1247_v46  ;;  %v1760_v54 = vrot.slane %v1746_v44, %v1752_v38 }
 0x1ad   : > { %v5155_v4 = vpop.f32.mrf.mxu1  ;;  %v1363_v57 = vpop.f32.mrf.mxu0 }
 0x1ae   : > { %v1399_v34 = vadd.f32 %v1363_v57, %v1248_v36  ;;  %v1753_v36 = vrot.slane %v3809_v32, %v1752_v38 }
 0x1af   : > { %v5157_v58 = vpop.f32.mrf.mxu1  ;;  %v1367_v6 = vpop.f32.mrf.mxu0 }
 0x1b0   : > { %v1762_v57 = vpack.i.b16 %v1753_v36, %v1753_v36 }
 0x1b1   : > { %v5159_v7 = vpop.f32.mrf.mxu1  ;;  %v5161_v8 = vpop.f32.mrf.mxu0 }
 0x1b2   : > { %v5213_v0 = vrot.slane %v1762_v57, %v5210_v16 }
 0x1b3   : > { %v5163_v9 = vpop.f32.mrf.mxu1  ;;  %v5165_v5 = vpop.f32.mrf.mxu0 }
 0x1b5   : > { %v5167_v1 = vpop.f32.mrf.mxu1  ;;  %v5169_v13 = vpop.f32.mrf.mxu0 }
 0x1b7   : > { %v5171_v14 = vpop.f32.mrf.mxu1  ;;  %v5173_v62 = vpop.f32.mrf.mxu0 }
 0x1b8   : > { %5602 = vst [vmem:[#allocation6_spill] sm:$0xff] %v5171_v14 }
 0x1b9   : > { %v5175_v15 = vpop.f32.mrf.mxu1  ;;  %v5177_v3 = vpop.f32.mrf.mxu0 }
 0x1ba   : > { %5603 = vst [vmem:[#allocation7_spill] sm:$0xff] %v5175_v15 }
 0x1bb   : > { %v5179_v21 = vpop.f32.mrf.mxu0  ;;  %v1508_v12 = vpop.f32.mrf.mxu1 }
 0x1bc   : > { %v1547_v45 = vadd.f32 %v1508_v12, %v1396_v56  ;;  %v1400_v56 = vadd.f32 %v1367_v6, %v5143_v50 }
 0x1bd   : > { %v5181_v22 = vpop.f32.mrf.mxu0  ;;  %v1510_v24 = vpop.f32.mrf.mxu1 }
 0x1be   : > { %v1548_v18 = vadd.f32 %v1510_v24, %v1397_v55  ;;  %v1252_v55 = vadd.f32 %v5151_v59, %v5123_v23 }
 0x1bf   : > { %v5183_v61 = vpop.f32.mrf.mxu0  ;;  %v1512_v17 = vpop.f32.mrf.mxu1 }
 0x1c0   : > { %5604 = vst [vmem:[#allocation8_spill] sm:$0xff] %v5183_v61  ;;  %v1549_v20 = vadd.f32 %v1512_v17, %v1398_v2  ;;  %v1401_v2 = vadd.f32 %v5161_v8, %v5147_v31 }
 0x1c1   : > { %v5188_v27 = vpop.f32.mrf.mxu0  ;;  %v1514_v37 = vpop.f32.mrf.mxu1 }
 0x1c2   : > { %5605 = vst [vmem:[#allocation9_spill] sm:$0xff] %v5188_v27  ;;  %v1550_v27 = vadd.f32 %v1514_v37, %v1399_v34  ;;  %v1402_v34 = vadd.f32 %v5165_v5, %v5149_v49  ;;  %v1253_v49 = vadd.f32 %v5153_v60, %v5127_v30 }
 0x1c3   : > { %v5190_v39 = vpop.f32.mrf.mxu0  ;;  %v1518_v42 = vpop.f32.mrf.mxu1 }
 0x1c4   : > { %5606 = vst [vmem:[#allocation10_spill] sm:$0xff] %v5190_v39  ;;  %v1769_v39 = vpack.i.b16 %v1760_v54, %v1760_v54 }
 0x1c5   : > { %v5192_v46 = vpop.f32.mrf.mxu0  ;;  %v1520_v48 = vpop.f32.mrf.mxu1 }
 0x1c6   : > { %5607 = vst [vmem:[#allocation11_spill] sm:$0xff] %v5192_v46  ;;  %v5223_v24 = vrot.slane %v1769_v39, %v5210_v16  ;;  %v1552_v23 = vadd.f32 %v1520_v48, %v1401_v2  ;;  %v1254_v48 = vadd.f32 %v5155_v4, %v5131_v33 }
 0x1c7   : > { %v1522_v40 = vpop.f32.mrf.mxu1  ;;  %v1659_v52 = vpop.f32.mrf.mxu0 }
 0x1c8   : > { %v1698_v10 = vadd.f32 %v1659_v52, %v1547_v45  ;;  %v1553_v59 = vadd.f32 %v1522_v40, %v1402_v34  ;;  %v1255_v40 = vadd.f32 %v5157_v58, %v5133_v35 }
 0x1c9   : > { %v1524_v53 = vpop.f32.mrf.mxu1  ;;  %v1661_v63 = vpop.f32.mrf.mxu0 }
 0x1ca   : > { %v1699_v15 = vadd.f32 %v1661_v63, %v1548_v18  ;;  %v1714_v12 = vmax.f32 %v1698_v10, 0.0  ;;  %v1404_v63 = vadd.f32 %v5173_v62, %v1253_v49  ;;  %v1256_v10 = vadd.f32 %v5159_v7, %v5135_v41 }
 0x1cb   : > { %v1528_v32 = vpop.f32.mrf.mxu1  ;;  %v1663_v46 = vpop.f32.mrf.mxu0  ;;  %v1406_v33 = vadd.f32 %v5179_v21, %v1255_v40 }
 0x1cc   : > { %v1700_v61 = vadd.f32 %v1663_v46, %v1549_v20  ;;  %v1551_v46 = vadd.f32 %v1518_v42, %v1400_v56  ;;  %v1715_v36 = vmax.f32 %v1699_v15, 0.0  ;;  %v1555_v58 = vadd.f32 %v1528_v32, %v1404_v63 }
 0x1cd   : > { %v1530_v14 = vpop.f32.mrf.mxu1  ;;  %v1665_v38 = vpop.f32.mrf.mxu0  ;;  %v1108_v32 = vadd.f32 %v5141_v19, %v5125_v29  ;;  %v5608_v29 = vld [vmem:[#allocation6_spill] sm:$0xff] }
 0x1ce   : > { %v1716_v44 = vmax.f32 %v1700_v61, 0.0  ;;  %v1701_v26 = vadd.f32 %v1665_v38, %v1550_v27  ;;  %v1403_v61 = vadd.f32 %v5169_v13, %v1252_v55  ;;  %v1405_v38 = vadd.f32 %v5177_v3, %v1254_v48 }
 0x1cf   : > { %v1532_v17 = vpop.f32.mrf.mxu1  ;;  %v1669_v37 = vpop.f32.mrf.mxu0  ;;  %v1407_v55 = vadd.f32 %v5181_v22, %v1256_v10  ;;  %v1259_v19 = vadd.f32 %v5608_v29, %v1108_v32 }
 0x1d0   : > { %v1730_v50 = vpack.c.bf16 %v1716_v44, %v1714_v12  ;;  %v1717_v6 = vmax.f32 %v1701_v26, 0.0  ;;  %v1702_v31 = vadd.f32 %v1669_v37, %v1551_v46  ;;  %v1554_v8 = vadd.f32 %v1524_v53, %v1403_v61 }
 0x1d1   : > { %v1534_v27 = vpop.f32.mrf.mxu1  ;;  %v1671_v52 = vpop.f32.mrf.mxu0  ;;  %v1106_v26 = vadd.f32 %v5137_v43, %v5119_v11  ;;  %v1556_v7 = vadd.f32 %v1530_v14, %v1405_v38  ;;  %v1557_v3 = vadd.f32 %v1532_v17, %v1406_v33  ;;  %v1107_v37 = vadd.f32 %v5139_v47, %v5121_v25 }
 0x1d2   : > { %v1731_v54 = vpack.c.bf16 %v1717_v6, %v1715_v36  ;;  %v5229_v45 = vmul.bf16 %v5213_v0, %v1730_v50  ;;  %v1703_v42 = vadd.f32 %v1671_v52, %v1552_v23  ;;  %v1718_v53 = vmax.f32 %v1702_v31, 0.0  ;;  %v5610_v31 = vld [vmem:[#allocation7_spill] sm:$0xff] }
 0x1d3   : > { %v1538_v5 = vpop.f32.mrf.mxu1  ;;  %v1673_v39 = vpop.f32.mrf.mxu0  ;;  %v1257_v46 = vadd.f32 %v5163_v9, %v1106_v26  ;;  %v1558_v36 = vadd.f32 %v1534_v27, %v1407_v55  ;;  %v1109_v25 = vadd.f32 %v5145_v51, %v5129_v28  ;;  %v1258_v47 = vadd.f32 %v5167_v1, %v1107_v37  ;;  %v5609_v9 = vld [vmem:[#allocation8_spill] sm:$0xff]  ;;  %v5612_v28 = vld [vmem:[#allocation10_spill] sm:$0xff] }
 0x1d4   : > { %v5232_v15 = vmul.bf16 %v5223_v24, %v1731_v54  ;;  %v1704_v13 = vadd.f32 %v1673_v39, %v1553_v59  ;;  %v1719_v62 = vmax.f32 %v1703_v42, 0.0  ;;  %v1410_v51 = vadd.f32 %v5612_v28, %v1259_v19 }
 0x1d5   : > { %v1540_v30 = vpop.f32.mrf.mxu1  ;;  %v1675_v60 = vpop.f32.mrf.mxu0  ;;  %v1408_v17 = vadd.f32 %v5609_v9, %v1257_v46  ;;  %v1260_v49 = vadd.f32 %v5610_v31, %v1109_v25  ;;  %v5614_v37 = vmov 0  }
 0x1d6   : > { %v1720_v57 = vmax.f32 %v1704_v13, 0.0  ;;  %v1705_v18 = vadd.f32 %v1675_v60, %v1554_v8  ;;  %v3811_v20 = vcombine.high %v5229_v45, %v5232_v15  ;;  %v3810_v35 = vcombine.low %v5229_v45, %v5232_v15  ;;  %v5611_v8 = vld [vmem:[#allocation9_spill] sm:$0xff]  ;;  %268 = vst.msk [vmem:[#allocation2 + $0x5c] sm:$0xf] %vm260_vm10, %v5614_v37  ;;  %261 = vst.msk [vmem:[#allocation2 + $0x8] sm:$0xf] %vm260_vm10, %v5614_v37 }
 0x1d7   : > { %v1542_v4 = vpop.f32.mrf.mxu1  ;;  %v1679_v56 = vpop.f32.mrf.mxu0  ;;  %v1409_v39 = vadd.f32 %v5611_v8, %v1258_v47  ;;  %v1559_v48 = vadd.f32 %v1538_v5, %v1408_v17  ;;  %262 = vst.msk [vmem:[#allocation2 + $0x14] sm:$0xf] %vm260_vm10, %v5614_v37  ;;  %263 = vst.msk [vmem:[#allocation2 + $0x20] sm:$0xf] %vm260_vm10, %v5614_v37 }
 0x1d8   : > { %v1732_v12 = vpack.c.bf16 %v1720_v57, %v1718_v53  ;;  %v1721_v44 = vmax.f32 %v1705_v18, 0.0  ;;  %v1706_v21 = vadd.f32 %v1679_v56, %v1555_v58  ;;  %v5613_v53 = vld [vmem:[#allocation11_spill] sm:$0xff]  ;;  %v1561_v33 = vadd.f32 %v1542_v4, %v1410_v51  ;;  %264 = vst.msk [vmem:[#allocation2 + $0x2c] sm:$0xf] %vm260_vm10, %v5614_v37  ;;  %265 = vst.msk [vmem:[#allocation2 + $0x38] sm:$0xf] %vm260_vm10, %v5614_v37 }
 0x1d9   : > { %v1544_v2 = vpop.f32.mrf.mxu1  ;;  %v1681_v41 = vpop.f32.mrf.mxu0  ;;  %v1411_v57 = vadd.f32 %v5613_v53, %v1260_v49  ;;  %v1560_v38 = vadd.f32 %v1540_v30, %v1409_v39  ;;  %266 = vst.msk [vmem:[#allocation2 + $0x44] sm:$0xf] %vm260_vm10, %v5614_v37  ;;  %267 = vst.msk [vmem:[#allocation2 + $0x50] sm:$0xf] %vm260_vm10, %v5614_v37 }
 0x1da   : > { %v1733_v34 = vpack.c.bf16 %v1721_v44, %v1719_v62  ;;  %v5258_v11 = vmul.bf16 %v5213_v0, %v1732_v12  ;;  %v1707_v14 = vadd.f32 %v1681_v41, %v1556_v7  ;;  %v1722_v52 = vmax.f32 %v1706_v21, 0.0 }
 0x1db   : > { %v1683_v50 = vpop.f32.mrf.mxu0  ;;  %v5255_v6 = vpop.f32.mrf.mxu1  ;;  %v1562_v62 = vadd.f32 %v1544_v2, %v1411_v57 }
 0x1dc   : > { %v5261_v43 = vmul.bf16 %v5223_v24, %v1733_v34  ;;  %v1708_v22 = vadd.f32 %v1683_v50, %v1557_v3  ;;  %v1723_v40 = vmax.f32 %v1707_v14, 0.0 }
 0x1dd   : > { %v1685_v61 = vpop.f32.mrf.mxu0  ;;  %v5268_v27 = vpop.f32.mrf.mxu1 }
 0x1de   : > { %v1724_v23 = vmax.f32 %v1708_v22, 0.0  ;;  %v1709_v59 = vadd.f32 %v1685_v61, %v1558_v36  ;;  %v3813_v54 = vcombine.high %v5258_v11, %v5261_v43  ;;  %v3812_v13 = vcombine.low %v5258_v11, %v5261_v43 }
 0x1df   : > { %v1689_v1 = vpop.f32.mrf.mxu0  ;;  %v5275_v42 = vpop.f32.mrf.mxu1 }
 0x1e0   : > { %v1734_v63 = vpack.c.bf16 %v1724_v23, %v1722_v52  ;;  %v1725_v60 = vmax.f32 %v1709_v59, 0.0  ;;  %v1710_v58 = vadd.f32 %v1689_v1, %v1559_v48 }
 0x1e1   : > { %v1691_v18 = vpop.f32.mrf.mxu0  ;;  %v5280_v10 = vpop.f32.mrf.mxu1 }
 0x1e2   : > { %v1735_v56 = vpack.c.bf16 %v1725_v60, %v1723_v40  ;;  %v1779_v26 = vmul.bf16 %v5213_v0, %v1734_v63  ;;  %v1711_v55 = vadd.f32 %v1691_v18, %v1560_v38  ;;  %v1726_v34 = vmax.f32 %v1710_v58, 0.0  ;;  %v1930_v63 = vpop.permute.xlu0 %1929 }
 0x1e3   : > { %v1693_v12 = vpop.f32.mrf.mxu0  ;;  %v5282_v44 = vpop.f32.mrf.mxu1 }
 0x1e4   : > { %v1780_v5 = vmul.bf16 %v5223_v24, %v1735_v56  ;;  %v1712_v41 = vadd.f32 %v1693_v12, %v1561_v33  ;;  %v1727_v36 = vmax.f32 %v1711_v55, 0.0 }
 0x1e5   : > { %v1695_v7 = vpop.f32.mrf.mxu0  ;;  %v5286_v3 = vpop.f32.mrf.mxu1 }
 0x1e6   : > { %v1728_v21 = vmax.f32 %v1712_v41, 0.0  ;;  %v1713_v30 = vadd.f32 %v1695_v7, %v1562_v62  ;;  %v3815_v4 = vcombine.high %v1779_v26, %v1780_v5  ;;  %v3814_v46 = vcombine.low %v1779_v26, %v1780_v5 }
 0x1e7   : > { %v5296_v2 = vpop.f32.mrf.mxu1  ;;  %v5298_v32 = vpop.f32.mrf.mxu0 }
 0x1e8   : > { %v1736_v50 = vpack.c.bf16 %v1728_v21, %v1726_v34  ;;  %v1729_v14 = vmax.f32 %v1713_v30, 0.0 }
 0x1e9   : > { %v5300_v22 = vpop.f32.mrf.mxu1  ;;  %v5302_v25 = vpop.f32.mrf.mxu0 }
 0x1ea   : > { %v1737_v47 = vpack.c.bf16 %v1729_v14, %v1727_v36  ;;  %v1781_v9 = vmul.bf16 %v5213_v0, %v1736_v50 }
 0x1eb   : > { %v4078_v29 = vpop.f32.mrf.mxu1  ;;  %v5304_v19 = vpop.f32.mrf.mxu0 }
 0x1ec   : > { %v1782_v17 = vmul.bf16 %v5223_v24, %v1737_v47  ;;  %v1925_v24 = vpop.permute.xlu1 %1924 }
 0x1ed   : > { %v2141_v61 = vpop.f32.mrf.mxu1  ;;  %v5308_v52 = vpop.f32.mrf.mxu0 }
 0x1ee   : > { %v3817_v23 = vcombine.high %v1781_v9, %v1782_v17  ;;  %v3816_v59 = vcombine.low %v1781_v9, %v1782_v17 }
 0x1ef   : > { %v4079_v31 = vpop.f32.mrf.mxu1  ;;  %v5310_v49 = vpop.f32.mrf.mxu0 }
 0x1f0   : > { %1829 = vrot.lane.b32.xlu0 %v3817_v23, %s4425_s20  ;;  %1827 = vrot.lane.b32.xlu1 %v3816_v59, %s4425_s20  ;;  %v1915_v57 = vpop.permute.xlu1 %1914 }
 0x1f1   : > { %v2144_v8 = vpop.f32.mrf.mxu1  ;;  %v5314_v39 = vpop.f32.mrf.mxu0 }
 0x1f3   : > { %v5316_v28 = vpop.f32.mrf.mxu1  ;;  %v5318_v0 = vpop.f32.mrf.mxu0 }
 0x1f4   : > { %1825 = vrot.lane.b32.xlu0 %v3815_v4, %s4425_s20  ;;  %1823 = vrot.lane.b32.xlu1 %v3814_v46, %s4425_s20 }
 0x1f5   : > { %v2157_v51 = vpop.f32.mrf.mxu1  ;;  %v5322_v1 = vpop.f32.mrf.mxu0 }
 0x1f7   : > { %v5324_v48 = vpop.f32.mrf.mxu1  ;;  %v4114_v40 = vpop.f32.mrf.mxu0 }
 0x1f8   : > { %1821 = vrot.lane.b32.xlu0 %v3813_v54, %s4425_s20  ;;  %1819 = vrot.lane.b32.xlu1 %v3812_v13, %s4425_s20  ;;  %v5353_v54 = vld [vmem:[%s5592_s4] sm:$0xff]   ;;  %v1920_v13 = vpop.permute.xlu0 %1919 }
 0x1f9   : > { %v5334_v60 = vpop.f32.mrf.mxu1  ;;  %v5336_v53 = vpop.f32.mrf.mxu0  ;;  %4176 = vmatprep.mubr.msk.bf16.mxu0 %vm3180_vm11, %v5353_v54 }
 0x1fb   : > { %v4102_v18 = vpop.f32.mrf.mxu1  ;;  %v5338_v38 = vpop.f32.mrf.mxu0 }
 0x1fc   : > { %1817 = vrot.lane.b32.xlu0 %v3811_v20, %s4425_s20  ;;  %1815 = vrot.lane.b32.xlu1 %v3810_v35, %s4425_s20  ;;  %v1905_v20 = vpop.permute.xlu1 %1904  ;;  %v1910_v62 = vpop.permute.xlu0 %1909 }
 0x1fd   : > { %v2379_v11 = vpop.f32.mrf.mxu1  ;;  %v5348_v43 = vpop.f32.mrf.mxu0  ;;  %v2055_v7 = vadd.f32 %v5255_v6, %v1905_v20  ;;  %v2056_v14 = vadd.f32 %v5275_v42, %v1910_v62  ;;  %v2057_v42 = vadd.f32 %v5286_v3, %v1915_v57 }
 0x1ff   : > { %v4103_v33 = vpop.f32.mrf.mxu1  ;;  %v5355_v56 = vpop.f32.mrf.mxu0  ;;  %v2174_v30 = vadd.f32 %v4078_v29, %v2055_v7  ;;  %v2175_v6 = vadd.f32 %v4079_v31, %v2056_v14  ;;  %v2059_v29 = vadd.f32 %v5282_v44, %v1925_v24  ;;  %v2176_v31 = vadd.f32 %v2157_v51, %v2057_v42 }
 0x200   : > { %v1895_v5 = vpop.permute.xlu1 %1894  ;;  %v1900_v4 = vpop.permute.xlu0 %1899  ;;  %v2058_v24 = vadd.f32 %v5300_v22, %v1920_v13 }
 0x201   : > { %v2382_v58 = vpop.f32.mrf.mxu1  ;;  %v5359_v45 = vpop.f32.mrf.mxu0  ;;  %v2053_v46 = vadd.f32 %v5268_v27, %v1895_v5  ;;  %v2054_v23 = vadd.f32 %v5280_v10, %v1900_v4  ;;  %v2293_v59 = vadd.f32 %v5298_v32, %v2174_v30  ;;  %v2178_v10 = vadd.f32 %v5316_v28, %v2059_v29 }
 0x202   : > { %v2060_v32 = vadd.f32 %v5296_v2, %v1930_v63  ;;  %v2295_v63 = vadd.f32 %v5314_v39, %v2176_v31 }
 0x203   : > { %v4106_v15 = vpop.f32.mrf.mxu1  ;;  %v5361_v35 = vpop.f32.mrf.mxu0  ;;  %v2172_v47 = vadd.f32 %v2141_v61, %v2053_v46  ;;  %v2173_v5 = vadd.f32 %v2144_v8, %v2054_v23  ;;  %v2412_v7 = vadd.f32 %v4102_v18, %v2293_v59  ;;  %v2294_v46 = vadd.f32 %v5304_v19, %v2175_v6 }
 0x204   : > { %v2179_v3 = vadd.f32 %v5324_v48, %v2060_v32  ;;  %v2297_v19 = vadd.f32 %v5310_v49, %v2178_v10 }
 0x205   : > { %v2395_v12 = vpop.f32.mrf.mxu1  ;;  %v5363_v26 = vpop.f32.mrf.mxu0  ;;  %v2291_v27 = vadd.f32 %v5302_v25, %v2172_v47  ;;  %v2292_v44 = vadd.f32 %v5308_v52, %v2173_v5  ;;  %v2531_v25 = vadd.f32 %v4114_v40, %v2412_v7  ;;  %v2413_v8 = vadd.f32 %v4103_v33, %v2294_v46 }
 0x206   : > { %v2416_v22 = vadd.f32 %v4106_v15, %v2297_v19  ;;  %v2298_v48 = vadd.f32 %v5318_v0, %v2179_v3  ;;  %v2414_v47 = vadd.f32 %v2395_v12, %v2295_v63 }
 0x207   : > { %v4107_v55 = vpop.f32.mrf.mxu1  ;;  %v4138_v41 = vpop.f32.mrf.mxu0  ;;  %v2410_v4 = vadd.f32 %v2379_v11, %v2291_v27  ;;  %v2411_v2 = vadd.f32 %v2382_v58, %v2292_v44  ;;  %v2177_v11 = vadd.f32 %v5334_v60, %v2058_v24  ;;  %v2532_v33 = vadd.f32 %v5338_v38, %v2413_v8 }
 0x208   : > { %v2417_v39 = vadd.f32 %v4107_v55, %v2298_v48  ;;  %v2535_v29 = vadd.f32 %v5355_v56, %v2416_v22 }
 0x209   : > { %v5366_v34 = vpop.f32.mrf.mxu1  ;;  %v2736_v21 = vpop.f32.mrf.mxu0  ;;  %v2529_v28 = vadd.f32 %v5336_v53, %v2410_v4  ;;  %v2530_v49 = vadd.f32 %v5348_v43, %v2411_v2 }
 0x20b   : > { %v4126_v36 = vpop.f32.mrf.mxu1  ;;  %v4139_v50 = vpop.f32.mrf.mxu0 }
 0x20c   : > { %v2650_v51 = vadd.f32 %v4126_v36, %v2531_v25  ;;  %v2296_v36 = vadd.f32 %v5322_v1, %v2177_v11 }
 0x20d   : > { %v2617_v9 = vpop.f32.mrf.mxu1  ;;  %v5370_v17 = vpop.f32.mrf.mxu0 }
 0x20e   : > { %v2648_v13 = vadd.f32 %v2617_v9, %v2529_v28  ;;  %v2769_v53 = vadd.f32 %v4138_v41, %v2650_v51  ;;  %v2533_v9 = vadd.f32 %v5359_v45, %v2414_v47  ;;  %v2415_v0 = vadd.f32 %v5366_v34, %v2296_v36 }
 0x20f   : > { %v4127_v20 = vpop.f32.mrf.mxu1  ;;  %v5374_v37 = vpop.f32.mrf.mxu0 }
 0x210   : > { %v2651_v58 = vadd.f32 %v4127_v20, %v2532_v33  ;;  %v2767_v27 = vadd.f32 %v2736_v21, %v2648_v13  ;;  %v2536_v20 = vadd.f32 %v5361_v35, %v2417_v39 }
 0x211   : > { %v2620_v61 = vpop.f32.mrf.mxu1  ;;  %v2752_v62 = vpop.f32.mrf.mxu0 }
 0x212   : > { %v2649_v38 = vadd.f32 %v2620_v61, %v2530_v49  ;;  %v2770_v7 = vadd.f32 %v4139_v50, %v2651_v58  ;;  %v2534_v61 = vadd.f32 %v5363_v26, %v2415_v0 }
 0x213   : > { %v4130_v30 = vpop.f32.mrf.mxu1  ;;  %v5382_v14 = vpop.f32.mrf.mxu0 }
 0x214   : > { %v2654_v43 = vadd.f32 %v4130_v30, %v2535_v29  ;;  %v2768_v46 = vadd.f32 %v5370_v17, %v2649_v38 }
 0x215   : > { %v2633_v57 = vpop.f32.mrf.mxu1  ;;  %v5387_v18 = vpop.f32.mrf.mxu0 }
 0x216   : > { %v2652_v1 = vadd.f32 %v2633_v57, %v2533_v9  ;;  %v2773_v34 = vadd.f32 %v5374_v37, %v2654_v43  ;;  %v1883_v37 = vld [vmem:[%s5589_s1 + $0x2] sm:$0x1]  ;;  %v3534_v43 = vld [vmem:[%s5593_s5] sm:$0x3] }
 0x217   : > { %v4131_v52 = vpop.f32.mrf.mxu1  ;;  %v4162_v40 = vpop.f32.mrf.mxu0  ;;  %v3026_v22 = vpack.i.b16 %v1883_v37, %v1883_v37 }
 0x218   : > { %v2655_v10 = vadd.f32 %v4131_v52, %v2536_v20  ;;  %v2771_v31 = vadd.f32 %v2752_v62, %v2652_v1 }
 0x219   : > { %v2636_v23 = vpop.f32.mrf.mxu1  ;;  %v2974_v59 = vpop.f32.mrf.mxu0 }
 0x21a   : > { %v2653_v30 = vadd.f32 %v2636_v23, %v2534_v61  ;;  %v2774_v17 = vadd.f32 %v5382_v14, %v2655_v10 }
 0x21b   : > { %v4150_v6 = vpop.f32.mrf.mxu1  ;;  %v4163_v60 = vpop.f32.mrf.mxu0 }
 0x21c   : > { %v2888_v15 = vadd.f32 %v4150_v6, %v2769_v53  ;;  %v2772_v63 = vadd.f32 %v5387_v18, %v2653_v30  ;;  %v3031_v53 = vrot.slane %v3026_v22, %v5210_v16 }
 0x21d   : > { %v2855_v12 = vpop.f32.mrf.mxu1  ;;  %v2977_v5 = vpop.f32.mrf.mxu0 }
 0x21e   : > { %v2886_v41 = vadd.f32 %v2855_v12, %v2767_v27  ;;  %v3007_v56 = vadd.f32 %v4162_v40, %v2888_v15 }
 0x21f   : > { %v4151_v55 = vpop.f32.mrf.mxu1  ;;  %v4166_v42 = vpop.f32.mrf.mxu0 }
 0x220   : > { %v2889_v21 = vadd.f32 %v4151_v55, %v2770_v7  ;;  %v3005_v4 = vadd.f32 %v2974_v59, %v2886_v41  ;;  %v3015_v25 = vmax.f32 %v3007_v56, 0.0  ;;  %v3286_v41 = vld [vmem:[%s5593_s5] sm:$0x3] }
 0x221   : > { %v2858_v45 = vpop.f32.mrf.mxu1  ;;  %v2990_v35 = vpop.f32.mrf.mxu0 }
 0x222   : > { %v2887_v32 = vadd.f32 %v2858_v45, %v2768_v46  ;;  %v3008_v50 = vadd.f32 %v4163_v60, %v2889_v21  ;;  %v3013_v19 = vmax.f32 %v3005_v4, 0.0 }
 0x223   : > { %v4154_v44 = vpop.f32.mrf.mxu1  ;;  %v4167_v62 = vpop.f32.mrf.mxu0 }
 0x224   : > { %v3016_v8 = vmax.f32 %v3008_v50, 0.0  ;;  %v2892_v24 = vadd.f32 %v4154_v44, %v2773_v34  ;;  %v3006_v3 = vadd.f32 %v2977_v5, %v2887_v32 }
 0x225   : > { %v2871_v57 = vpop.f32.mrf.mxu1  ;;  %v2993_v47 = vpop.f32.mrf.mxu0 }
 0x226   : > { %v3022_v26 = vpack.c.bf16 %v3016_v8, %v3015_v25  ;;  %v3014_v28 = vmax.f32 %v3006_v3, 0.0  ;;  %v2890_v2 = vadd.f32 %v2871_v57, %v2771_v31  ;;  %v3011_v52 = vadd.f32 %v4166_v42, %v2892_v24 }
 0x227   : > { %v4155_v51 = vpop.f32.mrf.mxu1 }
 0x228   : > { %v3021_v11 = vpack.c.bf16 %v3014_v28, %v3013_v19  ;;  %v2893_v40 = vadd.f32 %v4155_v51, %v2774_v17  ;;  %v3009_v13 = vadd.f32 %v2990_v35, %v2890_v2  ;;  %v3019_v23 = vmax.f32 %v3011_v52, 0.0 }
 0x229   : > { %v2874_v33 = vpop.f32.mrf.mxu1  ;;  %v3033_v38 = vmul.bf16 %v3031_v53, %v3022_v26  ;;  %v5617_v52 = vmov 0  }
 0x22a   : > { %v2891_v14 = vadd.f32 %v2874_v33, %v2772_v63  ;;  %v3012_v48 = vadd.f32 %v4167_v62, %v2893_v40  ;;  %v3017_v58 = vmax.f32 %v3009_v13, 0.0  ;;  %v3032_v16 = vmul.bf16 %v3031_v53, %v3021_v11  ;;  %v4342_v40 = vld [vmem:[%s5592_s4 + $0x8] ss:$0 sps:$4 sm:$0xff]   ;;  %v4351_v33 = vld [vmem:[%s5592_s4] sm:$0xff]  }
 0x22b   : > { %v3959_v0 = vcombine.high %v3033_v38, %v3033_v38  ;;  %v3958_v12 = vcombine.low %v3033_v38, %v3033_v38 }
 0x22c   : > { %v3020_v59 = vmax.f32 %v3012_v48, 0.0  ;;  %v3010_v49 = vadd.f32 %v2993_v47, %v2891_v14  ;;  %v3957_v5 = vcombine.high %v3032_v16, %v3032_v16  ;;  %v3956_v7 = vcombine.low %v3032_v16, %v3032_v16 }
 0x22e   : > { %v3024_v36 = vpack.c.bf16 %v3020_v59, %v3019_v23  ;;  %v3018_v39 = vmax.f32 %v3010_v49, 0.0 }
 0x230   : > { %v3035_v6 = vmul.bf16 %v3031_v53, %v3024_v36  ;;  %v3023_v60 = vpack.c.bf16 %v3018_v39, %v3017_v58 }
 0x232   : > { %v3034_v18 = vmul.bf16 %v3031_v53, %v3023_v60  ;;  %v3963_v29 = vcombine.high %v3035_v6, %v3035_v6  ;;  %v3962_v27 = vcombine.low %v3035_v6, %v3035_v6 }
 0x234   : > { %3070 = vrot.lane.b32.xlu0 %v3963_v29, %s4425_s20  ;;  %3068 = vrot.lane.b32.xlu1 %v3962_v27, %s4425_s20  ;;  %v3961_v15 = vcombine.high %v3034_v18, %v3034_v18  ;;  %v3960_v9 = vcombine.low %v3034_v18, %v3034_v18  ;;  %v4352_v29 = vld [vmem:[%s5592_s4 + $0x8] ss:$0 sps:$4 sm:$0xff]  }
 0x238   : > { %3066 = vrot.lane.b32.xlu0 %v3961_v15, %s4425_s20  ;;  %3064 = vrot.lane.b32.xlu1 %v3960_v9, %s4425_s20 }
 0x23c   : > { %3062 = vrot.lane.b32.xlu0 %v3959_v0, %s4425_s20  ;;  %3060 = vrot.lane.b32.xlu1 %v3958_v12, %s4425_s20 }
 0x240   : > { %3058 = vrot.lane.b32.xlu0 %v3957_v5, %s4425_s20  ;;  %3056 = vrot.lane.b32.xlu1 %v3956_v7, %s4425_s20 }
 0x244   : > { %3537 = vperm.xlu0 %4245, %v3534_v43   ;;  %3289 = vperm.xlu1 %4246, %v3286_v41  }
 0x262   : > { %v1830_v20 = vpop.permute.xlu0 %1829  ;;  %v1828_v1 = vpop.permute.xlu1 %1827 }
 0x263   : > { %v1838_v42 = vrot.slane %v1830_v20, 4  ;;  %v1837_v46 = vrot.slane %v1828_v1, 4 }
 0x265   : > { %v1847_v56 = vsel %vm1839_vm14, %v1838_v42, %v1830_v20  ;;  %v1846_v21 = vsel %vm1839_vm14, %v1837_v46, %v1828_v1  ;;  %1882 = vst.msk [vmem:[#allocation2 + $0x5c] sm:$0xf] %vm251_vm9, %v1838_v42  ;;  %1880 = vst.msk [vmem:[#allocation2 + $0x50] sm:$0xf] %vm251_vm9, %v1837_v46 }
 0x266   : > { %1881 = vst.msk [vmem:[#allocation2 + $0x54] sm:$0xff] %vm5424_vm15, %v1847_v56  ;;  %1879 = vst.msk [vmem:[#allocation2 + $0x48] sm:$0xff] %vm5424_vm15, %v1846_v21  ;;  %v1826_v61 = vpop.permute.xlu0 %1825  ;;  %v1824_v10 = vpop.permute.xlu1 %1823 }
 0x267   : > { %v1836_v45 = vrot.slane %v1826_v61, 4  ;;  %v1835_v34 = vrot.slane %v1824_v10, 4 }
 0x269   : > { %v1845_v4 = vsel %vm1839_vm14, %v1836_v45, %v1826_v61  ;;  %v1844_v32 = vsel %vm1839_vm14, %v1835_v34, %v1824_v10  ;;  %1876 = vst.msk [vmem:[#allocation2 + $0x38] sm:$0xf] %vm251_vm9, %v1835_v34  ;;  %1878 = vst.msk [vmem:[#allocation2 + $0x44] sm:$0xf] %vm251_vm9, %v1836_v45 }
 0x26a   : > { %1877 = vst.msk [vmem:[#allocation2 + $0x3c] sm:$0xff] %vm5424_vm15, %v1845_v4  ;;  %1875 = vst.msk [vmem:[#allocation2 + $0x30] sm:$0xff] %vm5424_vm15, %v1844_v32  ;;  %v1822_v50 = vpop.permute.xlu0 %1821  ;;  %v1820_v31 = vpop.permute.xlu1 %1819 }
 0x26b   : > { %v1834_v30 = vrot.slane %v1822_v50, 4  ;;  %v1833_v44 = vrot.slane %v1820_v31, 4 }
 0x26d   : > { %v1843_v35 = vsel %vm1839_vm14, %v1834_v30, %v1822_v50  ;;  %v1842_v25 = vsel %vm1839_vm14, %v1833_v44, %v1820_v31  ;;  %v4329_v8 = vld [vmem:[#allocation2 + $0x48] ss:$12 sps:$4 sm:$0xff]   ;;  %1872 = vst.msk [vmem:[#allocation2 + $0x20] sm:$0xf] %vm251_vm9, %v1833_v44  ;;  %1874 = vst.msk [vmem:[#allocation2 + $0x2c] sm:$0xf] %vm251_vm9, %v1834_v30 }
 0x26e   : > { %1873 = vst.msk [vmem:[#allocation2 + $0x24] sm:$0xff] %vm5424_vm15, %v1843_v35  ;;  %1871 = vst.msk [vmem:[#allocation2 + $0x18] sm:$0xff] %vm5424_vm15, %v1842_v25  ;;  %v1818_v24 = vpop.permute.xlu0 %1817  ;;  %v1816_v3 = vpop.permute.xlu1 %1815  ;;  %v4331_v17 = vld [vmem:[#allocation2 + $0x4c] ss:$12 sps:$4 sm:$0xff]  }
 0x26f   : > { %v1832_v57 = vrot.slane %v1818_v24, 4  ;;  %v1831_v19 = vrot.slane %v1816_v3, 4  ;;  %3195 = vmatprep.subr.bf16.mxu1 %v4331_v17 }
 0x270   : > { %3196 = vmatpush1.bf16.msra.mxu1 %v4329_v8 }
 0x271   : > { %v1841_v26 = vsel %vm1839_vm14, %v1832_v57, %v1818_v24  ;;  %v1840_v28 = vsel %vm1839_vm14, %v1831_v19, %v1816_v3  ;;  %v4332_v2 = vld [vmem:[#allocation2 + $0x30] ss:$12 sps:$4 sm:$0xff]   ;;  %1868 = vst.msk [vmem:[#allocation2 + $0x8] sm:$0xf] %vm251_vm9, %v1831_v19  ;;  %1870 = vst.msk [vmem:[#allocation2 + $0x14] sm:$0xf] %vm251_vm9, %v1832_v57 }
 0x272   : > { %1869 = vst.msk [vmem:[#allocation2 + $0xc] sm:$0xff] %vm5424_vm15, %v1841_v26  ;;  %1867 = vst.msk [vmem:[#allocation2] sm:$0xff] %vm5424_vm15, %v1840_v28  ;;  %v4334_v37 = vld [vmem:[#allocation2 + $0x34] ss:$12 sps:$4 sm:$0xff]  }
 0x273   : > { %3197 = vmatprep.subr.bf16.mxu1 %v4334_v37 }
 0x274   : > { %3198 = vmatpush1.bf16.msra.mxu1 %v4332_v2 }
 0x275   : > { %v4335_v51 = vld [vmem:[#allocation2 + $0x18] ss:$12 sps:$4 sm:$0xff]   ;;  %v4337_v62 = vld [vmem:[#allocation2 + $0x1c] ss:$12 sps:$4 sm:$0xff]  }
 0x276   : > { %3199 = vmatprep.subr.bf16.mxu1 %v4337_v62 }
 0x278   : > { %3200 = vmatpush1.bf16.msra.mxu1 %v4335_v51 }
 0x279   : > { %v4338_v63 = vld [vmem:[#allocation2] ss:$12 sps:$4 sm:$0xff]   ;;  %v4340_v11 = vld [vmem:[#allocation2 + $0x4] ss:$12 sps:$4 sm:$0xff]  }
 0x27a   : > { %3201 = vmatprep.subr.bf16.mxu1 %v4340_v11 }
 0x27c   : > { %3202 = vmatpush1.bf16.msra.mxu1 %v4338_v63 }
 0x27f   : > { %3978 = vmatmul.mubr.msk.bf16.vlgmr.msra.gmra.mxu1 %vm3180_vm11, %v5353_v54 }
 0x280   : > { %3229 = vmatprep.mubr.bf16.mxu1 %v5617_v52 }
 0x287   : > { %3979 = vmatmul.mubr.msk.bf16.gmra.mxu1 %vm3180_vm11, %v4342_v40 }
 0x288   : > { %4188 = vmatprep.mubr.msk.bf16.mxu1 %vm3180_vm11, %v4351_v33 }
 0x2a6   : > { %v3071_v22 = vpop.permute.xlu0 %3070  ;;  %v3069_v13 = vpop.permute.xlu1 %3068 }
 0x2a7   : > { %3088 = vst.msk [vmem:[#allocation2 + $0x5c] sm:$0xf] %vm3080_vm0, %v3071_v22  ;;  %3087 = vst.msk [vmem:[#allocation2 + $0x50] sm:$0xf] %vm3080_vm0, %v3069_v13 }
 0x2aa   : > { %v3067_v54 = vpop.permute.xlu0 %3066  ;;  %v3065_v14 = vpop.permute.xlu1 %3064 }
 0x2ab   : > { %3086 = vst.msk [vmem:[#allocation2 + $0x44] sm:$0xf] %vm3080_vm0, %v3067_v54  ;;  %3085 = vst.msk [vmem:[#allocation2 + $0x38] sm:$0xf] %vm3080_vm0, %v3065_v14 }
 0x2ae   : > { %v3063_v48 = vpop.permute.xlu0 %3062  ;;  %v3061_v47 = vpop.permute.xlu1 %3060  ;;  %v4343_v23 = vld [vmem:[#allocation2 + $0x50] ss:$12 sps:$4 sm:$0xff]  }
 0x2af   : > { %3084 = vst.msk [vmem:[#allocation2 + $0x2c] sm:$0xf] %vm3080_vm0, %v3063_v48  ;;  %3083 = vst.msk [vmem:[#allocation2 + $0x20] sm:$0xf] %vm3080_vm0, %v3061_v47  ;;  %v4344_v59 = vld [vmem:[#allocation2 + $0x50] ss:$12 sps:$4 sm:$0xff]   ;;  %4168 = vmatprep.subr.bf16.mxu0 %v4343_v23 }
 0x2b0   : > { %4180 = vmatprep.subr.bf16.mxu1 %v4344_v59  ;;  %4169 = vmatpush3.bf16.msra.mxu0 %v4343_v23 }
 0x2b1   : > { %4181 = vmatpush3.bf16.msra.mxu1 %v4344_v59 }
 0x2b2   : > { %v3059_v49 = vpop.permute.xlu0 %3058  ;;  %v3057_v53 = vpop.permute.xlu1 %3056  ;;  %v4345_v58 = vld [vmem:[#allocation2 + $0x38] ss:$12 sps:$4 sm:$0xff]  }
 0x2b3   : > { %3082 = vst.msk [vmem:[#allocation2 + $0x14] sm:$0xf] %vm3080_vm0, %v3059_v49  ;;  %3081 = vst.msk [vmem:[#allocation2 + $0x8] sm:$0xf] %vm3080_vm0, %v3057_v53  ;;  %v4346_v36 = vld [vmem:[#allocation2 + $0x38] ss:$12 sps:$4 sm:$0xff]   ;;  %4170 = vmatprep.subr.bf16.mxu0 %v4345_v58 }
 0x2b4   : > { %4182 = vmatprep.subr.bf16.mxu1 %v4346_v36  ;;  %4171 = vmatpush3.bf16.msra.mxu0 %v4345_v58 }
 0x2b5   : > { %4183 = vmatpush3.bf16.msra.mxu1 %v4346_v36 }
 0x2b6   : > { %v4347_v39 = vld [vmem:[#allocation2 + $0x20] ss:$12 sps:$4 sm:$0xff]  }
 0x2b7   : > { %v4348_v6 = vld [vmem:[#allocation2 + $0x20] ss:$12 sps:$4 sm:$0xff]   ;;  %4172 = vmatprep.subr.bf16.mxu0 %v4347_v39 }
 0x2b8   : > { %4184 = vmatprep.subr.bf16.mxu1 %v4348_v6  ;;  %4173 = vmatpush3.bf16.msra.mxu0 %v4347_v39 }
 0x2b9   : > { %4185 = vmatpush3.bf16.msra.mxu1 %v4348_v6 }
 0x2ba   : > { %v4349_v60 = vld [vmem:[#allocation2 + $0x8] ss:$12 sps:$4 sm:$0xff]  }
 0x2bb   : > { %v4350_v18 = vld [vmem:[#allocation2 + $0x8] ss:$12 sps:$4 sm:$0xff]   ;;  %4174 = vmatprep.subr.bf16.mxu0 %v4349_v60 }
 0x2bc   : > { %4186 = vmatprep.subr.bf16.mxu1 %v4350_v18  ;;  %4175 = vmatpush3.bf16.msra.mxu0 %v4349_v60 }
 0x2bd   : > { %4187 = vmatpush3.bf16.msra.mxu1 %v4350_v18 }
 0x2bf   : > { %4177 = vmatmul.mubr.msk.bf16.vlgmr.msra.gmra.mxu0 %vm3180_vm11, %v4342_v40  ;;  %v3538_v51 = vpop.permute.xlu0 %3537  ;;  %v3290_v62 = vpop.permute.xlu1 %3289 }
 0x2c0   : > { %4189 = vmatmul.mubr.msk.bf16.vlgmr.msra.gmra.mxu1 %vm3180_vm11, %v4352_v29 }
 0x33f   : > { %v5484_v27 = vpop.f32.mrf.mxu1 }
 0x340   : > { %v3297_v38 = vrot.slane %v5484_v27, 2  ;;  %v3313_v15 = vrot.slane %v5484_v27, 4  ;;  %v3329_v16 = vrot.slane %v5484_v27, 6  ;;  %v3292_v60 = vadd.f32 %v3290_v62, %v5484_v27 }
 0x341   : > { %v5488_v9 = vpop.f32.mrf.mxu1 }
 0x342   : > { %v3314_v0 = vrot.slane %v5488_v9, 4  ;;  %3316 = vrot.lane.b32.xlu0 %v3313_v15, %s4417_s17  ;;  %3300 = vrot.lane.b32.xlu1 %v3297_v38, %s4416_s14  ;;  %v3298_v7 = vrot.slane %v5488_v9, 2  ;;  %v3330_v43 = vrot.slane %v5488_v9, 6 }
 0x343   : > { %v3225_v12 = vpop.f32.mrf.mxu1 }
 0x344   : > { %v3361_v42 = vrot.slane %v3225_v12, 2  ;;  %v3377_v56 = vrot.slane %v3225_v12, 4  ;;  %v3393_v61 = vrot.slane %v3225_v12, 6 }
 0x345   : > { %v3227_v5 = vpop.f32.mrf.mxu1 }
 0x346   : > { %3332 = vrot.lane.b32.xlu0 %v3329_v16, %s4418_s28  ;;  %3318 = vrot.lane.b32.xlu1 %v3314_v0, %s4417_s17  ;;  %v3362_v46 = vrot.slane %v3227_v5, 2  ;;  %v3378_v21 = vrot.slane %v3227_v5, 4  ;;  %v3394_v10 = vrot.slane %v3227_v5, 6  ;;  %v3293_v0 = vadd.f32 %v3290_v62, %v5488_v9 }
 0x347   : > { %v3231_v41 = vpop.f32.mrf.mxu1 }
 0x349   : > { %v3233_v20 = vpop.f32.mrf.mxu1 }
 0x34a   : > { %3334 = vrot.lane.b32.xlu1 %v3330_v43, %s4418_s28  ;;  %3302 = vrot.lane.b32.xlu0 %v3298_v7, %s4416_s14 }
 0x34b   : > { %v3235_v1 = vpop.f32.mrf.mxu1 }
 0x34d   : > { %v3236_v55 = vpop.f32.mrf.mxu1 }
 0x34e   : > { %3348 = vrot.lane.b32.xlu0 %v3225_v12, %s4419_s10  ;;  %3350 = vrot.lane.b32.xlu1 %v3227_v5, %s4419_s10 }
 0x352   : > { %3364 = vrot.lane.b32.xlu0 %v3361_v42, %s4420_s11  ;;  %3366 = vrot.lane.b32.xlu1 %v3362_v46, %s4420_s11 }
 0x356   : > { %3380 = vrot.lane.b32.xlu0 %v3377_v56, %s4421_s12  ;;  %3382 = vrot.lane.b32.xlu1 %v3378_v21, %s4421_s12 }
 0x35a   : > { %3396 = vrot.lane.b32.xlu0 %v3393_v61, %s4422_s15  ;;  %3398 = vrot.lane.b32.xlu1 %v3394_v10, %s4422_s15 }
 0x35e   : > { %3412 = vrot.lane.b32.xlu0 %v3231_v41, %s5618_s19  ;;  %3414 = vrot.lane.b32.xlu1 %v3233_v20, %s5618_s19 }
 0x37f   : > { %v4178_v45 = vpop.f32.mrf.mxu0 }
 0x380   : > { %v4190_v34 = vpop.f32.mrf.mxu1 }
 0x381   : > { %v3272_v4 = vpop.f32.mrf.mxu0 }
 0x382   : > { %v3299_v32 = vrot.slane %v3272_v4, 2  ;;  %v3315_v50 = vrot.slane %v3272_v4, 4  ;;  %v5510_v31 = vpop.f32.mrf.mxu1  ;;  %v3331_v35 = vrot.slane %v3272_v4, 6 }
 0x383   : > { %v4179_v30 = vpop.f32.mrf.mxu0  ;;  %v3542_v25 = vrot.slane %v5510_v31, 2  ;;  %v3547_v8 = vrot.slane %v5510_v31, 4  ;;  %v3552_v3 = vrot.slane %v5510_v31, 6  ;;  %v3540_v21 = vadd.f32 %v3538_v51, %v5510_v31 }
 0x384   : > { %3320 = vrot.lane.b32.xlu0 %v3315_v50, %s4417_s17  ;;  %3304 = vrot.lane.b32.xlu1 %v3299_v32, %s4416_s14  ;;  %v4191_v44 = vpop.f32.mrf.mxu1 }
 0x385   : > { %v3275_v24 = vpop.f32.mrf.mxu0 }
 0x386   : > { %v3363_v17 = vrot.slane %v3275_v24, 2  ;;  %v3379_v57 = vrot.slane %v3275_v24, 4  ;;  %v3523_v19 = vpop.f32.mrf.mxu1  ;;  %v3395_v26 = vrot.slane %v3275_v24, 6 }
 0x387   : > { %v3562_v28 = vrot.slane %v3523_v19, 2  ;;  %v3567_v2 = vrot.slane %v3523_v19, 4  ;;  %v3572_v37 = vrot.slane %v3523_v19, 6 }
 0x388   : > { %3336 = vrot.lane.b32.xlu0 %v3331_v35, %s4418_s28  ;;  %3543 = vrot.lane.b32.xlu1 %v3542_v25, %s4416_s14  ;;  %s242_s14 = sand.u32 1, %s4405_s22  }
 0x389   : > { %s3585_s20 = scalar_lea.sflag [#allocation4], %s242_s14 }
 0x38c   : > { %3548 = vrot.lane.b32.xlu1 %v3547_v8, %s4417_s17  ;;  %3352 = vrot.lane.b32.xlu0 %v3275_v24, %s4419_s10  ;;  %s4192_s17 = smul.u32 6, %s242_s14 }
 0x390   : > { %3553 = vrot.lane.b32.xlu1 %v3552_v3, %s4418_s28  ;;  %3368 = vrot.lane.b32.xlu0 %v3363_v17, %s4420_s11  ;;  %s4194_s28 = smul.u32 96, %s4483_s25  ;;  %s4426_s25 = smov [#allocation3]  }
 0x391   : > { %s4357_s29 = sshll.u32 %s4426_s25, 4  ;;  %s4358_s29 = int_to_ptr.vmem [resolvable:$false] %s4357_s29 }
 0x392   : > { %s3597_s16 = scalar_lea.hbm %s5594_s6, %s4194_s28  ;;  %s4359_s9 = scalar_lea.vmem %s4358_s29, 192 }
 0x394   : > { %3558 = vrot.lane.b32.xlu1 %v3523_v19, %s4419_s10  ;;  %3384 = vrot.lane.b32.xlu0 %v3379_v57, %s4421_s12  ;;  %s244_s10 = scalar_lea.vmem [#allocation3], %s4192_s17 }
 0x398   : > { %3563 = vrot.lane.b32.xlu1 %v3562_v28, %s4420_s11  ;;  %3400 = vrot.lane.b32.xlu0 %v3395_v26, %s4422_s15  ;;  %s3599_s11 = sshll.u32 %s244_s10, 4  ;;  %s3600_s11 = int_to_ptr.vmem [resolvable:$true] %s3599_s11 }
 0x399   : > { %s4353_s26 = scalar_lea.vmem %s3600_s11, 96  ;;  %p4360_p0 = scmp.lt.s32.totalorder %s3600_s11, %s4358_s29 }
 0x39a   : > { %p4354_p11 = scmp.ne.s32.totalorder %s3600_s11, %s4353_s26  ;;  %p4361_p1 = scmp.lt.s32.totalorder %s4359_s9, %s4353_s26 }
 0x39c   : > { %3568 = vrot.lane.b32.xlu1 %v3567_v2, %s4421_s12  ;;  %3416 = vrot.lane.b32.xlu0 %v4178_v45, %s5618_s19  ;;  %p4355_p12 = pnand %p4354_p11, %p4500_p5  ;;  %p4362_p2 = por %p4361_p1, %p4360_p0 }
 0x39e   : > { %p4356_p13 = pneg %p4355_p12 }
 0x3a0   : > { %3573 = vrot.lane.b32.xlu1 %v3572_v37, %s4422_s15  ;;  %3578 = vrot.lane.b32.xlu0 %v4190_v34, %s5618_s19  ;;  %p4363_p3 = pnand %p4362_p2, %p4356_p13 }
 0x3b4   : > { %v3317_v63 = vpop.permute.xlu0 %3316  ;;  %v3301_v11 = vpop.permute.xlu1 %3300 }
 0x3b8   : > { %v3333_v52 = vpop.permute.xlu0 %3332  ;;  %v3319_v40 = vpop.permute.xlu1 %3318 }
 0x3b9   : > { %v3323_v15 = vsel %vm698_vm2, %v3317_v63, %v3319_v40 }
 0x3bc   : > { %v3303_v33 = vpop.permute.xlu0 %3302  ;;  %v3335_v22 = vpop.permute.xlu1 %3334 }
 0x3bd   : > { %v3307_v6 = vsel %vm547_vm1, %v3301_v11, %v3303_v33  ;;  %v3339_v41 = vsel %vm849_vm3, %v3333_v52, %v3335_v22 }
 0x3be   : > { %v3311_v18 = vadd.f32 %v3307_v6, %v3292_v60 }
 0x3c0   : > { %v3349_v13 = vpop.permute.xlu0 %3348  ;;  %v3351_v54 = vpop.permute.xlu1 %3350  ;;  %v3327_v12 = vadd.f32 %v3323_v15, %v3311_v18 }
 0x3c1   : > { %v3355_v46 = vsel %vm1000_vm4, %v3349_v13, %v3351_v54 }
 0x3c2   : > { %v3343_v1 = vadd.f32 %v3339_v41, %v3327_v12 }
 0x3c4   : > { %v3365_v14 = vpop.permute.xlu0 %3364  ;;  %v3367_v48 = vpop.permute.xlu1 %3366  ;;  %v3359_v61 = vadd.f32 %v3355_v46, %v3343_v1 }
 0x3c5   : > { %v3371_v4 = vsel %vm1151_vm5, %v3365_v14, %v3367_v48 }
 0x3c6   : > { %v3375_v31 = vadd.f32 %v3371_v4, %v3359_v61 }
 0x3c8   : > { %v3381_v47 = vpop.permute.xlu0 %3380  ;;  %v3383_v23 = vpop.permute.xlu1 %3382 }
 0x3c9   : > { %v3387_v44 = vsel %vm1302_vm6, %v3381_v47, %v3383_v23 }
 0x3ca   : > { %v3391_v26 = vadd.f32 %v3387_v44, %v3375_v31 }
 0x3cc   : > { %v3397_v59 = vpop.permute.xlu0 %3396  ;;  %v3399_v49 = vpop.permute.xlu1 %3398 }
 0x3cd   : > { %v3403_v17 = vsel %vm1453_vm7, %v3397_v59, %v3399_v49 }
 0x3ce   : > { %v3407_v51 = vadd.f32 %v3403_v17, %v3391_v26 }
 0x3d0   : > { %v3413_v53 = vpop.permute.xlu0 %3412  ;;  %v3415_v58 = vpop.permute.xlu1 %3414 }
 0x3d1   : > { %v3419_v2 = vsel %vm1604_vm8, %v3413_v53, %v3415_v58 }
 0x3f6   : > { %v3321_v36 = vpop.permute.xlu0 %3320  ;;  %v3305_v39 = vpop.permute.xlu1 %3304 }
 0x3f7   : > { %v3308_v16 = vsel %vm547_vm1, %v3303_v33, %v3305_v39  ;;  %v3324_v20 = vsel %vm698_vm2, %v3319_v40, %v3321_v36  ;;  %v3423_v33 = vadd.f32 %v3419_v2, %v3407_v51  ;;  %vm3582_vm1 = vcmask 254976  }
 0x3f8   : > { %v3312_v5 = vadd.f32 %v3308_v16, %v3293_v0 }
 0x3fa   : > { %v3337_v29 = vpop.permute.xlu0 %3336  ;;  %v3544_v38 = vpop.permute.xlu1 %3543  ;;  %v3328_v55 = vadd.f32 %v3324_v20, %v3312_v5 }
 0x3fb   : > { %v3340_v56 = vsel %vm849_vm3, %v3335_v22, %v3337_v29  ;;  %v3546_v32 = vadd.f32 %v3544_v38, %v3540_v21 }
 0x3fc   : > { %v3344_v10 = vadd.f32 %v3340_v56, %v3328_v55 }
 0x3fe   : > { %v3353_v7 = vpop.permute.xlu0 %3352  ;;  %v3549_v43 = vpop.permute.xlu1 %3548 }
 0x3ff   : > { %v3356_v9 = vsel %vm1000_vm4, %v3351_v54, %v3353_v7  ;;  %v3551_v35 = vadd.f32 %v3549_v43, %v3546_v32 }
 0x400   : > { %v3360_v30 = vadd.f32 %v3356_v9, %v3344_v10 }
 0x402   : > { %v3369_v27 = vpop.permute.xlu0 %3368  ;;  %v3554_v42 = vpop.permute.xlu1 %3553 }
 0x403   : > { %v3372_v50 = vsel %vm1151_vm5, %v3367_v48, %v3369_v27  ;;  %v3556_v57 = vadd.f32 %v3554_v42, %v3551_v35 }
 0x404   : > { %v3376_v8 = vadd.f32 %v3372_v50, %v3360_v30 }
 0x406   : > { %v3385_v45 = vpop.permute.xlu0 %3384  ;;  %v3559_v34 = vpop.permute.xlu1 %3558 }
 0x407   : > { %v3388_v25 = vsel %vm1302_vm6, %v3383_v23, %v3385_v45  ;;  %v3561_v37 = vadd.f32 %v3559_v34, %v3556_v57 }
 0x408   : > { %v3392_v28 = vadd.f32 %v3388_v25, %v3376_v8 }
 0x40a   : > { %v3401_v24 = vpop.permute.xlu0 %3400  ;;  %v3564_v3 = vpop.permute.xlu1 %3563 }
 0x40b   : > { %v3404_v19 = vsel %vm1453_vm7, %v3399_v49, %v3401_v24  ;;  %v3566_v52 = vadd.f32 %v3564_v3, %v3561_v37 }
 0x40c   : > { %v3408_v62 = vadd.f32 %v3404_v19, %v3392_v28 }
 0x40e   : > { %v3417_v63 = vpop.permute.xlu0 %3416  ;;  %v3569_v11 = vpop.permute.xlu1 %3568 }
 0x40f   : > { %v3420_v40 = vsel %vm1604_vm8, %v3415_v58, %v3417_v63  ;;  %v3571_v13 = vadd.f32 %v3569_v11, %v3566_v52 }
 0x410   : > { %v3424_v22 = vadd.f32 %v3420_v40, %v3408_v62 }
 0x412   : > { %v3427_v54 = vcombine.low %v3423_v33, %v3424_v22  ;;  %v3574_v14 = vpop.permute.xlu1 %3573  ;;  %v3579_v47 = vpop.permute.xlu0 %3578 }
 0x413   : > { %v3576_v48 = vadd.f32 %v3574_v14, %v3571_v13 }
 0x414   : > { %3982 = vst.sshfl [vmem:[%s244_s10] sm:$0x33 pattern:$0x76325410] %v3427_v54 }
 0x415   : > { %v3581_v23 = vadd.f32 %v3579_v47, %v3576_v48 }
 0x417   : > { %3583 = vst.msk [vmem:[%s244_s10 + $0x4] sm:$0x3] %vm3582_vm1, %v3581_v23 }
 0x418   : > { %4366 = shalt.err (!%p4363_p3)
}
 0x419   : > { %s4367_s13 = scalar_lea.hbm %s3597_s16, 96  ;;  %s4371_s14 = scalar_lea.hbm %s5594_s6, 192 }
 0x41a   : > { %p4368_p4 = scmp.ne.s32.totalorder %s3597_s16, %s4367_s13  ;;  %p4372_p9 = scmp.lt.s32.totalorder %s3597_s16, %s5594_s6 }
 0x41b   : > { %p4373_p10 = scmp.lt.s32.totalorder %s4371_s14, %s4367_s13 }
 0x41c   : > { %p4369_p7 = pnand %p4368_p4, %p4500_p5 }
 0x41d   : > { %p4374_p11 = por %p4373_p10, %p4372_p9 }
 0x41e   : > { %p4370_p8 = pneg %p4369_p7 }
 0x420   : > { %p4375_p12 = pnand %p4374_p11, %p4370_p8 }
 0x422   : > { %4378 = shalt.err (!%p4375_p12)
}
 0x423   : > { %4195 = dma.vmem_to_hbm [thread:$0]  (%p4500_p5), %s3600_s11, 96, %s3597_s16, %s3585_s20  }
 0x424 PF: > { %p4201_p13 = scmp.ge.s32.totalorder %s4413_s24, 2  ;;  %s3611_s10 = sand.u32 1, %s4401_s21  }
 0x425   : > { %s3612_s12 = scalar_lea.sflag [#allocation4], %s3611_s10 }
 0x426   : > { %p4198_p0 = pnand %p4201_p13, %p4504_p6 }
 0x428   : > { %p4199_p1 = pneg %p4198_p0 }
 0x42a   : > { %4396 = dma.done.wait (%p4199_p1), %s3612_s12, 96  }
 0x42b   : > { %4398 = vsyncadd (%p4199_p1), %s3612_s12, 4294967200  ;;  %p16_p2 = scmp.ge.s32.totalorder %s4487_s27, 4   ;;  %s5619_s21 = smov %s4405_s22 }
 0x42c   : > { %s5620_s22 = smov %s4409_s23  ;;  %s5621_s23 = smov %s4498_s30 }
 0x42d   : > { %s5622_s24 = smov %s4487_s27  ;;  %18 = sbr.rel (!%p16_p2) target bundleno = 3 (0x3), region = 87 }
 0x432   :  { %3617 = vsyncpa [#allocation4], 1 }
 0x433   :  { %3619 = vsyncpa [#allocation4 + $0x1], 1 }

</bundles_post_ra>
